<compile_context>
chip_gen: v6e
topology: v6e:2x2x1
jax: 0.10.0
libtpu: 0.0.40
codegen_flags: <defaults>
</compile_context>

<pallas_src>
import jax
import jax.numpy as jnp
from jax import lax
from jax.experimental import pallas as pl
from jax.experimental.pallas import tpu as pltpu

# ---------------- static model configuration (small, deterministic) ----------------
IN_SIZE_DICT = {"o": 10, "r": 12, "w": 14, "p": 9}   # per-type input feature dims
N_NODES      = {"o": 6,  "r": 4,  "w": 5,  "p": 3}   # per-type node counts
COMMON   = 16          # common_size
HIDDEN   = 8           # hidden_size
HEADS    = 2           # num_heads = [2]  (single HMP layer)
OUT      = 16          # out_size
SEM_HID  = 128         # SemanticAttention hidden_size (PyTorch default)
NTN_OUT  = 16          # NTN output dim
M_PATHS  = 2           # number of meta-paths
NEG_SLOPE = 0.2        # GATConv leaky-relu slope

ORDER      = ["o", "r", "w", "p"]
N_TOTAL    = sum(N_NODES.values())                 # 18
IMG_SIZE   = N_NODES["o"] + N_NODES["r"]           # 10
TEXT_SIZE  = N_NODES["w"] + N_NODES["p"]           # 8
HD         = HIDDEN * HEADS                        # 16
DSUM       = sum(IN_SIZE_DICT[t] for t in ORDER)   # 45


def _elu(x):
    return jnp.where(x > 0, x, jnp.exp(jnp.minimum(x, 0.0)) - 1.0)


def _leaky_relu(x):
    return jnp.where(x > 0, x, NEG_SLOPE * x)


def _sigmoid(x):
    return 1.0 / (1.0 + jnp.exp(-x))


# ============================== fused HSGMP kernel ==================================
def hsgmp_kernel(x_ref, wfc_ref, bfc_ref, adj_ref, wgat_ref, bgat_ref,
                 al_ref, ar_ref, sw1_ref, sb1_ref, sw2r_ref,
                 pw_ref, pb_ref, vw_ref, vb_ref, tw_ref, tb_ref,
                 ntn_wa_ref, tiler_ref, sel_ref, uv_ref, ut_ref, ub_ref,
                 s1w_ref, s1b_ref, s2w_ref, s2b_ref, s3w_ref, s3b_ref,
                 out_ref):
    f32 = jnp.float32

    # ---- per-type input projection (block-diagonal weight) -> common space ----
    h = jnp.dot(x_ref[...], wfc_ref[...], preferred_element_type=f32) + bfc_ref[...]

    # ---- per-meta-path dense GATConv (multi-head edge softmax, ELU) ----
    z_list = []
    for m in range(M_PATHS):                                  # static unrolled (M=2)
        feat = jnp.dot(h, wgat_ref[m], preferred_element_type=f32)     # (N, HD)
        el = jnp.dot(feat, al_ref[m], preferred_element_type=f32)      # (N, H)
        er = jnp.dot(feat, ar_ref[m], preferred_element_type=f32)      # (N, H)
        elT = jnp.transpose(el)                                         # (H, N) — tiny
        adj = adj_ref[m]                                                # (N, N) [dst, src]

        head_outs = []
        for hh in range(HEADS):                               # static unrolled (H=2)
            e = _leaky_relu(er[:, hh:hh + 1] + elT[hh:hh + 1, :])       # (N, N)
            e = jnp.where(adj > 0, e, -1e30)
            e = e - jnp.max(e, axis=1, keepdims=True)
            p = jnp.exp(e) * adj
            denom = jnp.maximum(jnp.sum(p, axis=1, keepdims=True), 1e-9)
            alpha = p * pl.reciprocal(denom, approx=True)               # EUP, not VALU div
            head_outs.append(
                jnp.dot(alpha, feat[:, hh * HIDDEN:(hh + 1) * HIDDEN],
                        preferred_element_type=f32))                    # (N, HIDDEN)
        z = jnp.concatenate(head_outs, axis=1) + bgat_ref[m]             # (N, HD)
        z_list.append(_elu(z))

    # ---- semantic attention over meta-paths (VPU reduce instead of (N,1) matvec) ----
    w_vals = []
    for m in range(M_PATHS):
        proj = jnp.tanh(jnp.dot(z_list[m], sw1_ref[...],
                                preferred_element_type=f32) + sb1_ref[...])   # (N, SEM_HID)
        scores = jnp.sum(proj * sw2r_ref[...], axis=1, keepdims=True)          # (N, 1) VPU
        w_vals.append(jnp.sum(scores, axis=0, keepdims=True) / float(N_TOTAL)) # (1, 1)

    wmax = w_vals[0]
    for m in range(1, M_PATHS):
        wmax = jnp.maximum(wmax, w_vals[m])
    exps = [jnp.exp(w - wmax) for w in w_vals]
    sdenom = exps[0]
    for m in range(1, M_PATHS):
        sdenom = sdenom + exps[m]
    sem = (exps[0] / sdenom) * z_list[0]
    for m in range(1, M_PATHS):
        sem = sem + (exps[m] / sdenom) * z_list[m]                              # (N, HD)

    # ---- HMP predict + visual/textual context gating (mask-based, pure VPU) ----
    pred = jnp.dot(sem, pw_ref[...], preferred_element_type=f32) + pb_ref[...]  # (N, OUT)
    row = lax.broadcasted_iota(jnp.int32, (N_TOTAL, 1), 0)
    mask_v = (row < IMG_SIZE).astype(f32)                                        # (N, 1)
    mask_t = 1.0 - mask_v

    def gate(mask, n, cw, cb):
        c = jnp.sum(pred * mask, axis=0, keepdims=True) / float(n)               # (1, OUT)
        c = jnp.tanh(jnp.dot(c, cw, preferred_element_type=f32) + cb)            # context
        s = _sigmoid(jnp.sum(pred * c, axis=1, keepdims=True)) * mask            # (N, 1)
        return jnp.sum(s * pred, axis=0, keepdims=True)                          # (1, OUT)

    g_v = gate(mask_v, IMG_SIZE, vw_ref[...], vb_ref[...])
    g_t = gate(mask_t, TEXT_SIZE, tw_ref[...], tb_ref[...])

    # ---- NTN: bilinear via precomputed selector/tiler constants + linear, tanh ----
    gt_tiled = jnp.dot(g_t, tiler_ref[...], preferred_element_type=f32)          # (1, NTN_OUT*OUT)
    u = jnp.dot(g_v, ntn_wa_ref[...], preferred_element_type=f32)                # (1, NTN_OUT*OUT)
    bil = jnp.dot(u * gt_tiled, sel_ref[...], preferred_element_type=f32)        # (1, NTN_OUT)
    lin = (jnp.dot(g_v, uv_ref[...], preferred_element_type=f32)
           + jnp.dot(g_t, ut_ref[...], preferred_element_type=f32) + ub_ref[...])
    x = jnp.tanh(bil + lin)                                                       # (1, 16)

    # ---- `similar` MLP head: 16 -> 8 -> 4 -> 1 ----
    y = jnp.maximum(jnp.dot(x, s1w_ref[...], preferred_element_type=f32) + s1b_ref[...], 0.0)
    y = jnp.maximum(jnp.dot(y, s2w_ref[...], preferred_element_type=f32) + s2b_ref[...], 0.0)
    out_ref[...] = jnp.dot(y, s3w_ref[...], preferred_element_type=f32) + s3b_ref[...]


# ========================= one-time parameter packing (hoisted) =====================
def _block_diag_attn(a):  # a: (HEADS, HIDDEN) -> (HD, HEADS), so el = feat @ out
    out = jnp.zeros((HD, HEADS), jnp.float32)
    for h in range(HEADS):
        out = out.at[h * HIDDEN:(h + 1) * HIDDEN, h].set(a[h])
    return out


def prepare_packed(params):
    """Data-independent packing done ONCE (outside the per-call jit path)."""
    wfc = jnp.zeros((DSUM, COMMON), jnp.float32)
    bfc_rows = []
    c0 = 0
    for t in ORDER:
        d_t, n_t = IN_SIZE_DICT[t], N_NODES[t]
        wfc = wfc.at[c0:c0 + d_t, :].set(params["fc_w"][t])
        bfc_rows.append(jnp.broadcast_to(params["fc_b"][t][None, :], (n_t, COMMON)))
        c0 += d_t
    bfc = jnp.concatenate(bfc_rows, axis=0)                       # (N_TOTAL, COMMON)

    al = jnp.stack([_block_diag_attn(params["attn_l"][m]) for m in range(M_PATHS)])
    ar = jnp.stack([_block_diag_attn(params["attn_r"][m]) for m in range(M_PATHS)])
    sw2_row = jnp.transpose(params["sem_w2"])                     # (1, SEM_HID)

    # NTN bilinear rearrangement:  bil[0,k] = sum_ij g_v[i] W[k,i,j] g_t[j]
    ntn_wa = jnp.transpose(params["ntn_W"], (1, 0, 2)).reshape(OUT, NTN_OUT * OUT)
    tiler = jnp.tile(jnp.eye(OUT, dtype=jnp.float32), (1, NTN_OUT))
    sel = jnp.repeat(jnp.eye(NTN_OUT, dtype=jnp.float32), OUT, axis=0)

    return dict(wfc=wfc, bfc=bfc, al=al, ar=ar, sw2_row=sw2_row,
                ntn_wa=ntn_wa, tiler=tiler, sel=sel)


# ================================== forward wrapper =================================
@jax.jit
def hsgmp_forward(feats, params, packed, adj):
    # x_full: static zero-pad per type + one concatenate (no .at[].set chain per call)
    blocks = []
    c0 = 0
    for t in ORDER:
        d_t = IN_SIZE_DICT[t]
        blocks.append(jnp.pad(feats[t], ((0, 0), (c0, DSUM - c0 - d_t))))
        c0 += d_t
    x_full = jnp.concatenate(blocks, axis=0)                      # (N_TOTAL, DSUM)

    inputs = (x_full, packed["wfc"], packed["bfc"], adj,
              params["gat_w"], params["gat_b"], packed["al"], packed["ar"],
              params["sem_w1"], params["sem_b1"], packed["sw2_row"],
              params["pred_w"], params["pred_b"], params["vc_w"], params["vc_b"],
              params["tc_w"], params["tc_b"], packed["ntn_wa"], packed["tiler"],
              packed["sel"], params["ntn_Uv"], params["ntn_Ut"], params["ntn_Ub"],
              params["s1_w"], params["s1_b"], params["s2_w"], params["s2_b"],
              params["s3_w"], params["s3_b"])

    vmem = pl.BlockSpec(memory_space=pltpu.MemorySpace.VMEM)      # whole array, no pipeline
    return pl.pallas_call(
        hsgmp_kernel,
        in_specs=[vmem] * len(inputs),
        out_specs=vmem,
        out_shape=jax.ShapeDtypeStruct((1, 1), jnp.float32),
    )(*inputs)


# ============================ deterministic parameter init ==========================
def init_params(key):
    keys = iter(jax.random.split(key, 40))

    def nrm(shape):
        return jax.random.normal(next(keys), shape, dtype=jnp.float32) * 0.1

    p = {}
    p["fc_w"] = {t: nrm((IN_SIZE_DICT[t], COMMON)) for t in ORDER}
    p["fc_b"] = {t: nrm((COMMON,)) for t in ORDER}
    p["gat_w"] = nrm((M_PATHS, COMMON, HD))
    p["gat_b"] = nrm((M_PATHS, 1, HD))
    p["attn_l"] = nrm((M_PATHS, HEADS, HIDDEN))
    p["attn_r"] = nrm((M_PATHS, HEADS, HIDDEN))
    p["sem_w1"] = nrm((HD, SEM_HID))
    p["sem_b1"] = nrm((1, SEM_HID))
    p["sem_w2"] = nrm((SEM_HID, 1))
    p["pred_w"] = nrm((HD, OUT))
    p["pred_b"] = nrm((1, OUT))
    p["vc_w"] = nrm((OUT, OUT))
    p["vc_b"] = nrm((1, OUT))
    p["tc_w"] = nrm((OUT, OUT))
    p["tc_b"] = nrm((1, OUT))
    p["ntn_W"] = nrm((NTN_OUT, OUT, OUT))
    p["ntn_Uv"] = nrm((OUT, NTN_OUT))
    p["ntn_Ut"] = nrm((OUT, NTN_OUT))
    p["ntn_Ub"] = nrm((1, NTN_OUT))
    p["s1_w"] = nrm((16, 8))
    p["s1_b"] = nrm((1, 8))
    p["s2_w"] = nrm((8, 4))
    p["s2_b"] = nrm((1, 4))
    p["s3_w"] = nrm((4, 1))
    p["s3_b"] = nrm((1, 1))
    return p


def make_adj():
    # Dense [dst, src] adjacency per meta-path.  Self loops are REQUIRED: they
    # guarantee a finite row max for the masked edge softmax (no zero in-degree).
    adjs = []
    for m in range(M_PATHS):
        i = jnp.arange(N_TOTAL)[:, None]
        j = jnp.arange(N_TOTAL)[None, :]
        a = ((i + j + m) % 3 == 0).astype(jnp.float32)
        a = jnp.maximum(a, jnp.eye(N_TOTAL, dtype=jnp.float32))
        adjs.append(a)
    return jnp.stack(adjs)


# ================================ pure-JAX reference ================================
def ref_forward(feats, params, adj):
    h = jnp.concatenate([feats[t] @ params["fc_w"][t] + params["fc_b"][t] for t in ORDER], axis=0)
    z_list = []
    for m in range(M_PATHS):
        feat = h @ params["gat_w"][m]
        featH = feat.reshape(N_TOTAL, HEADS, HIDDEN)
        el = jnp.einsum("nhd,hd->nh", featH, params["attn_l"][m])
        er = jnp.einsum("nhd,hd->nh", featH, params["attn_r"][m])
        heads = []
        for hh in range(HEADS):
            e = _leaky_relu(er[:, hh:hh + 1] + el[:, hh][None, :])
            e = jnp.where(adj[m] > 0, e, -1e30)
            e = e - jnp.max(e, axis=1, keepdims=True)
            p = jnp.exp(e) * adj[m]
            denom = jnp.maximum(jnp.sum(p, axis=1, keepdims=True), 1e-9)
            heads.append((p / denom) @ feat[:, hh * HIDDEN:(hh + 1) * HIDDEN])
        z_list.append(_elu(jnp.concatenate(heads, axis=1) + params["gat_b"][m]))

    w_vals = [jnp.mean(jnp.tanh(z @ params["sem_w1"] + params["sem_b1"]) @ params["sem_w2"])
              for z in z_list]
    beta = jax.nn.softmax(jnp.stack(w_vals))
    sem = sum(beta[m] * z_list[m] for m in range(M_PATHS))

    pred = sem @ params["pred_w"] + params["pred_b"]
    pred_v, pred_t = pred[:IMG_SIZE], pred[IMG_SIZE:IMG_SIZE + TEXT_SIZE]

    def gate(px, cw, cb):
        c = jnp.mean(px, axis=0, keepdims=True)
        c = jnp.tanh(c @ cw + cb)
        s = _sigmoid(jnp.sum(px * c, axis=1, keepdims=True))
        return jnp.sum(s * px, axis=0, keepdims=True)

    g_v = gate(pred_v, params["vc_w"], params["vc_b"])
    g_t = gate(pred_t, params["tc_w"], params["tc_b"])

    bil = jnp.einsum("bi,kij,bj->bk", g_v, params["ntn_W"], g_t)
    lin = g_v @ params["ntn_Uv"] + g_t @ params["ntn_Ut"] + params["ntn_Ub"]
    x = jnp.tanh(bil + lin)
    y = jnp.maximum(x @ params["s1_w"] + params["s1_b"], 0.0)
    y = jnp.maximum(y @ params["s2_w"] + params["s2_b"], 0.0)
    return y @ params["s3_w"] + params["s3_b"]


# ======================================= main =======================================
if __name__ == "__main__":
    key = jax.random.PRNGKey(0)
    kf, kp = jax.random.split(key)
    fkeys = jax.random.split(kf, len(ORDER))
    feats = {t: jax.random.normal(fkeys[i], (N_NODES[t], IN_SIZE_DICT[t]), dtype=jnp.float32)
             for i, t in enumerate(ORDER)}
    params = init_params(kp)
    adj = make_adj()
    packed = prepare_packed(params)     # one-time, data-independent packing

    out = hsgmp_forward(feats, params, packed, adj)
    out = jax.block_until_ready(out)

    ref = ref_forward(feats, params, adj)
    assert out.shape == (1, 1), out.shape
    assert bool(jnp.all(jnp.isfinite(out))), out
    assert bool(jnp.allclose(out, ref, atol=5e-3, rtol=5e-3)), (out, ref)

    print("KERNEL_OK")
</pallas_src>

<mosaic_0001>
module attributes {stable_mosaic.version = 11 : i64} {
  func.func @hsgmp_kernel(%arg0: memref<18x45xf32, #tpu.memory_space<vmem>>, %arg1: memref<45x16xf32, #tpu.memory_space<vmem>>, %arg2: memref<18x16xf32, #tpu.memory_space<vmem>>, %arg3: memref<2x18x18xf32, #tpu.memory_space<vmem>>, %arg4: memref<2x16x16xf32, #tpu.memory_space<vmem>>, %arg5: memref<2x1x16xf32, #tpu.memory_space<vmem>>, %arg6: memref<2x16x2xf32, #tpu.memory_space<vmem>>, %arg7: memref<2x16x2xf32, #tpu.memory_space<vmem>>, %arg8: memref<16x128xf32, #tpu.memory_space<vmem>>, %arg9: memref<1x128xf32, #tpu.memory_space<vmem>>, %arg10: memref<1x128xf32, #tpu.memory_space<vmem>>, %arg11: memref<16x16xf32, #tpu.memory_space<vmem>>, %arg12: memref<1x16xf32, #tpu.memory_space<vmem>>, %arg13: memref<16x16xf32, #tpu.memory_space<vmem>>, %arg14: memref<1x16xf32, #tpu.memory_space<vmem>>, %arg15: memref<16x16xf32, #tpu.memory_space<vmem>>, %arg16: memref<1x16xf32, #tpu.memory_space<vmem>>, %arg17: memref<16x256xf32, #tpu.memory_space<vmem>>, %arg18: memref<16x256xf32, #tpu.memory_space<vmem>>, %arg19: memref<256x16xf32, #tpu.memory_space<vmem>>, %arg20: memref<16x16xf32, #tpu.memory_space<vmem>>, %arg21: memref<16x16xf32, #tpu.memory_space<vmem>>, %arg22: memref<1x16xf32, #tpu.memory_space<vmem>>, %arg23: memref<16x8xf32, #tpu.memory_space<vmem>>, %arg24: memref<1x8xf32, #tpu.memory_space<vmem>>, %arg25: memref<8x4xf32, #tpu.memory_space<vmem>>, %arg26: memref<1x4xf32, #tpu.memory_space<vmem>>, %arg27: memref<4x1xf32, #tpu.memory_space<vmem>>, %arg28: memref<1x1xf32, #tpu.memory_space<vmem>>, %arg29: memref<1x1xf32, #tpu.memory_space<vmem>>) attributes {dimension_semantics = [], scalar_prefetch = 0 : i64, scratch_operands = 0 : i64, tpu.core_type = #tpu.core_type<tc>} {
    %c0 = arith.constant 0 : index
    %c0_0 = arith.constant 0 : index
    %0 = vector.load %arg0[%c0, %c0_0] : memref<18x45xf32, #tpu.memory_space<vmem>>, vector<18x45xf32>
    %c0_1 = arith.constant 0 : index
    %c0_2 = arith.constant 0 : index
    %1 = vector.load %arg1[%c0_1, %c0_2] : memref<45x16xf32, #tpu.memory_space<vmem>>, vector<45x16xf32>
    %cst = arith.constant dense<0.000000e+00> : vector<18x16xf32>
    %2 = tpu.matmul %0, %1, %cst {dimension_numbers = #tpu.dot_dimension_numbers<[1], [0], [0], [1], [0, 0, 1, 1], [], []>} : vector<18x45xf32>, vector<45x16xf32>, vector<18x16xf32> -> vector<18x16xf32>
    %c0_3 = arith.constant 0 : index
    %c0_4 = arith.constant 0 : index
    %3 = vector.load %arg2[%c0_3, %c0_4] : memref<18x16xf32, #tpu.memory_space<vmem>>, vector<18x16xf32>
    %4 = arith.addf %2, %3 : vector<18x16xf32>
    %c0_5 = arith.constant 0 : index
    %c0_6 = arith.constant 0 : index
    %c0_7 = arith.constant 0 : index
    %5 = vector.load %arg4[%c0_5, %c0_6, %c0_7] : memref<2x16x16xf32, #tpu.memory_space<vmem>>, vector<1x16x16xf32>
    %6 = vector.shape_cast %5 : vector<1x16x16xf32> to vector<16x16xf32>
    %cst_8 = arith.constant dense<0.000000e+00> : vector<18x16xf32>
    %7 = tpu.matmul %4, %6, %cst_8 {dimension_numbers = #tpu.dot_dimension_numbers<[1], [0], [0], [1], [0, 0, 1, 1], [], []>} : vector<18x16xf32>, vector<16x16xf32>, vector<18x16xf32> -> vector<18x16xf32>
    %c0_9 = arith.constant 0 : index
    %c0_10 = arith.constant 0 : index
    %c0_11 = arith.constant 0 : index
    %8 = vector.load %arg6[%c0_9, %c0_10, %c0_11] : memref<2x16x2xf32, #tpu.memory_space<vmem>>, vector<1x16x2xf32>
    %9 = vector.shape_cast %8 : vector<1x16x2xf32> to vector<16x2xf32>
    %cst_12 = arith.constant dense<0.000000e+00> : vector<18x2xf32>
    %10 = tpu.matmul %7, %9, %cst_12 {dimension_numbers = #tpu.dot_dimension_numbers<[1], [0], [0], [1], [0, 0, 1, 1], [], []>} : vector<18x16xf32>, vector<16x2xf32>, vector<18x2xf32> -> vector<18x2xf32>
    %c0_13 = arith.constant 0 : index
    %c0_14 = arith.constant 0 : index
    %c0_15 = arith.constant 0 : index
    %11 = vector.load %arg7[%c0_13, %c0_14, %c0_15] : memref<2x16x2xf32, #tpu.memory_space<vmem>>, vector<1x16x2xf32>
    %12 = vector.shape_cast %11 : vector<1x16x2xf32> to vector<16x2xf32>
    %cst_16 = arith.constant dense<0.000000e+00> : vector<18x2xf32>
    %13 = tpu.matmul %7, %12, %cst_16 {dimension_numbers = #tpu.dot_dimension_numbers<[1], [0], [0], [1], [0, 0, 1, 1], [], []>} : vector<18x16xf32>, vector<16x2xf32>, vector<18x2xf32> -> vector<18x2xf32>
    %14 = tpu.transpose %10, [1, 0] : vector<18x2xf32> -> vector<2x18xf32>
    %c0_17 = arith.constant 0 : index
    %c0_18 = arith.constant 0 : index
    %c0_19 = arith.constant 0 : index
    %15 = vector.load %arg3[%c0_17, %c0_18, %c0_19] : memref<2x18x18xf32, #tpu.memory_space<vmem>>, vector<1x18x18xf32>
    %16 = vector.shape_cast %15 : vector<1x18x18xf32> to vector<18x18xf32>
    %17 = vector.extract_strided_slice %13 {offsets = [0, 0], sizes = [18, 1], strides = [1, 1]} : vector<18x2xf32> to vector<18x1xf32>
    %18 = vector.extract_strided_slice %14 {offsets = [0, 0], sizes = [1, 18], strides = [1, 1]} : vector<2x18xf32> to vector<1x18xf32>
    %19 = vector.broadcast %17 : vector<18x1xf32> to vector<18x18xf32>
    %20 = vector.broadcast %18 : vector<1x18xf32> to vector<18x18xf32>
    %21 = arith.addf %19, %20 : vector<18x18xf32>
    %cst_20 = arith.constant 0.000000e+00 : f32
    %22 = vector.broadcast %cst_20 : f32 to vector<18x18xf32>
    %23 = arith.cmpf ogt, %21, %22 : vector<18x18xf32>
    %cst_21 = arith.constant 2.000000e-01 : f32
    %24 = vector.broadcast %cst_21 : f32 to vector<18x18xf32>
    %25 = arith.mulf %24, %21 : vector<18x18xf32>
    %26 = arith.select %23, %21, %25 : vector<18x18xi1>, vector<18x18xf32>
    %cst_22 = arith.constant 0.000000e+00 : f32
    %27 = vector.broadcast %cst_22 : f32 to vector<18x18xf32>
    %28 = arith.cmpf ogt, %16, %27 : vector<18x18xf32>
    %cst_23 = arith.constant -1.000000e+30 : f32
    %29 = vector.broadcast %cst_23 : f32 to vector<18x18xf32>
    %30 = arith.select %28, %26, %29 : vector<18x18xi1>, vector<18x18xf32>
    %cst_24 = arith.constant dense<0xFF800000> : vector<18xf32>
    %31 = vector.multi_reduction <maximumf>, %30, %cst_24 [1] : vector<18x18xf32> to vector<18xf32>
    %32 = vector.shape_cast %31 : vector<18xf32> to vector<18x1xf32>
    %33 = vector.broadcast %32 : vector<18x1xf32> to vector<18x18xf32>
    %34 = arith.subf %30, %33 : vector<18x18xf32>
    %35 = math.exp %34 : vector<18x18xf32>
    %36 = arith.mulf %35, %16 : vector<18x18xf32>
    %cst_25 = arith.constant dense<0.000000e+00> : vector<18xf32>
    %37 = vector.multi_reduction <add>, %36, %cst_25 [1] : vector<18x18xf32> to vector<18xf32>
    %38 = vector.shape_cast %37 : vector<18xf32> to vector<18x1xf32>
    %cst_26 = arith.constant 9.99999971E-10 : f32
    %39 = vector.broadcast %cst_26 : f32 to vector<18x1xf32>
    %40 = arith.maximumf %38, %39 : vector<18x1xf32>
    %41 = tpu.reciprocal %40 {approx = true} : vector<18x1xf32> -> vector<18x1xf32>
    %42 = vector.broadcast %41 : vector<18x1xf32> to vector<18x18xf32>
    %43 = arith.mulf %36, %42 : vector<18x18xf32>
    %44 = vector.extract_strided_slice %7 {offsets = [0, 0], sizes = [18, 8], strides = [1, 1]} : vector<18x16xf32> to vector<18x8xf32>
    %cst_27 = arith.constant dense<0.000000e+00> : vector<18x8xf32>
    %45 = tpu.matmul %43, %44, %cst_27 {dimension_numbers = #tpu.dot_dimension_numbers<[1], [0], [0], [1], [0, 0, 1, 1], [], []>} : vector<18x18xf32>, vector<18x8xf32>, vector<18x8xf32> -> vector<18x8xf32>
    %46 = vector.extract_strided_slice %13 {offsets = [0, 1], sizes = [18, 1], strides = [1, 1]} : vector<18x2xf32> to vector<18x1xf32>
    %47 = vector.extract_strided_slice %14 {offsets = [1, 0], sizes = [1, 18], strides = [1, 1]} : vector<2x18xf32> to vector<1x18xf32>
    %48 = vector.broadcast %46 : vector<18x1xf32> to vector<18x18xf32>
    %49 = vector.broadcast %47 : vector<1x18xf32> to vector<18x18xf32>
    %50 = arith.addf %48, %49 : vector<18x18xf32>
    %cst_28 = arith.constant 0.000000e+00 : f32
    %51 = vector.broadcast %cst_28 : f32 to vector<18x18xf32>
    %52 = arith.cmpf ogt, %50, %51 : vector<18x18xf32>
    %cst_29 = arith.constant 2.000000e-01 : f32
    %53 = vector.broadcast %cst_29 : f32 to vector<18x18xf32>
    %54 = arith.mulf %53, %50 : vector<18x18xf32>
    %55 = arith.select %52, %50, %54 : vector<18x18xi1>, vector<18x18xf32>
    %cst_30 = arith.constant 0.000000e+00 : f32
    %56 = vector.broadcast %cst_30 : f32 to vector<18x18xf32>
    %57 = arith.cmpf ogt, %16, %56 : vector<18x18xf32>
    %cst_31 = arith.constant -1.000000e+30 : f32
    %58 = vector.broadcast %cst_31 : f32 to vector<18x18xf32>
    %59 = arith.select %57, %55, %58 : vector<18x18xi1>, vector<18x18xf32>
    %cst_32 = arith.constant dense<0xFF800000> : vector<18xf32>
    %60 = vector.multi_reduction <maximumf>, %59, %cst_32 [1] : vector<18x18xf32> to vector<18xf32>
    %61 = vector.shape_cast %60 : vector<18xf32> to vector<18x1xf32>
    %62 = vector.broadcast %61 : vector<18x1xf32> to vector<18x18xf32>
    %63 = arith.subf %59, %62 : vector<18x18xf32>
    %64 = math.exp %63 : vector<18x18xf32>
    %65 = arith.mulf %64, %16 : vector<18x18xf32>
    %cst_33 = arith.constant dense<0.000000e+00> : vector<18xf32>
    %66 = vector.multi_reduction <add>, %65, %cst_33 [1] : vector<18x18xf32> to vector<18xf32>
    %67 = vector.shape_cast %66 : vector<18xf32> to vector<18x1xf32>
    %cst_34 = arith.constant 9.99999971E-10 : f32
    %68 = vector.broadcast %cst_34 : f32 to vector<18x1xf32>
    %69 = arith.maximumf %67, %68 : vector<18x1xf32>
    %70 = tpu.reciprocal %69 {approx = true} : vector<18x1xf32> -> vector<18x1xf32>
    %71 = vector.broadcast %70 : vector<18x1xf32> to vector<18x18xf32>
    %72 = arith.mulf %65, %71 : vector<18x18xf32>
    %73 = vector.extract_strided_slice %7 {offsets = [0, 8], sizes = [18, 8], strides = [1, 1]} : vector<18x16xf32> to vector<18x8xf32>
    %cst_35 = arith.constant dense<0.000000e+00> : vector<18x8xf32>
    %74 = tpu.matmul %72, %73, %cst_35 {dimension_numbers = #tpu.dot_dimension_numbers<[1], [0], [0], [1], [0, 0, 1, 1], [], []>} : vector<18x18xf32>, vector<18x8xf32>, vector<18x8xf32> -> vector<18x8xf32>
    %75 = tpu.concatenate %45, %74 in 1 : vector<18x8xf32>, vector<18x8xf32> -> vector<18x16xf32>
    %c0_36 = arith.constant 0 : index
    %c0_37 = arith.constant 0 : index
    %c0_38 = arith.constant 0 : index
    %76 = vector.load %arg5[%c0_36, %c0_37, %c0_38] : memref<2x1x16xf32, #tpu.memory_space<vmem>>, vector<1x1x16xf32>
    %77 = vector.shape_cast %76 : vector<1x1x16xf32> to vector<1x16xf32>
    %78 = vector.broadcast %77 : vector<1x16xf32> to vector<18x16xf32>
    %79 = arith.addf %75, %78 : vector<18x16xf32>
    %cst_39 = arith.constant 0.000000e+00 : f32
    %80 = vector.broadcast %cst_39 : f32 to vector<18x16xf32>
    %81 = arith.cmpf ogt, %79, %80 : vector<18x16xf32>
    %cst_40 = arith.constant 0.000000e+00 : f32
    %82 = vector.broadcast %cst_40 : f32 to vector<18x16xf32>
    %83 = arith.minimumf %79, %82 : vector<18x16xf32>
    %84 = math.exp %83 : vector<18x16xf32>
    %cst_41 = arith.constant 1.000000e+00 : f32
    %85 = vector.broadcast %cst_41 : f32 to vector<18x16xf32>
    %86 = arith.subf %84, %85 : vector<18x16xf32>
    %87 = arith.select %81, %79, %86 : vector<18x16xi1>, vector<18x16xf32>
    %c1 = arith.constant 1 : index
    %c0_42 = arith.constant 0 : index
    %c0_43 = arith.constant 0 : index
    %88 = vector.load %arg4[%c1, %c0_42, %c0_43] : memref<2x16x16xf32, #tpu.memory_space<vmem>>, vector<1x16x16xf32>
    %89 = vector.shape_cast %88 : vector<1x16x16xf32> to vector<16x16xf32>
    %cst_44 = arith.constant dense<0.000000e+00> : vector<18x16xf32>
    %90 = tpu.matmul %4, %89, %cst_44 {dimension_numbers = #tpu.dot_dimension_numbers<[1], [0], [0], [1], [0, 0, 1, 1], [], []>} : vector<18x16xf32>, vector<16x16xf32>, vector<18x16xf32> -> vector<18x16xf32>
    %c1_45 = arith.constant 1 : index
    %c0_46 = arith.constant 0 : index
    %c0_47 = arith.constant 0 : index
    %91 = vector.load %arg6[%c1_45, %c0_46, %c0_47] : memref<2x16x2xf32, #tpu.memory_space<vmem>>, vector<1x16x2xf32>
    %92 = vector.shape_cast %91 : vector<1x16x2xf32> to vector<16x2xf32>
    %cst_48 = arith.constant dense<0.000000e+00> : vector<18x2xf32>
    %93 = tpu.matmul %90, %92, %cst_48 {dimension_numbers = #tpu.dot_dimension_numbers<[1], [0], [0], [1], [0, 0, 1, 1], [], []>} : vector<18x16xf32>, vector<16x2xf32>, vector<18x2xf32> -> vector<18x2xf32>
    %c1_49 = arith.constant 1 : index
    %c0_50 = arith.constant 0 : index
    %c0_51 = arith.constant 0 : index
    %94 = vector.load %arg7[%c1_49, %c0_50, %c0_51] : memref<2x16x2xf32, #tpu.memory_space<vmem>>, vector<1x16x2xf32>
    %95 = vector.shape_cast %94 : vector<1x16x2xf32> to vector<16x2xf32>
    %cst_52 = arith.constant dense<0.000000e+00> : vector<18x2xf32>
    %96 = tpu.matmul %90, %95, %cst_52 {dimension_numbers = #tpu.dot_dimension_numbers<[1], [0], [0], [1], [0, 0, 1, 1], [], []>} : vector<18x16xf32>, vector<16x2xf32>, vector<18x2xf32> -> vector<18x2xf32>
    %97 = tpu.transpose %93, [1, 0] : vector<18x2xf32> -> vector<2x18xf32>
    %c1_53 = arith.constant 1 : index
    %c0_54 = arith.constant 0 : index
    %c0_55 = arith.constant 0 : index
    %98 = vector.load %arg3[%c1_53, %c0_54, %c0_55] : memref<2x18x18xf32, #tpu.memory_space<vmem>>, vector<1x18x18xf32>
    %99 = vector.shape_cast %98 : vector<1x18x18xf32> to vector<18x18xf32>
    %100 = vector.extract_strided_slice %96 {offsets = [0, 0], sizes = [18, 1], strides = [1, 1]} : vector<18x2xf32> to vector<18x1xf32>
    %101 = vector.extract_strided_slice %97 {offsets = [0, 0], sizes = [1, 18], strides = [1, 1]} : vector<2x18xf32> to vector<1x18xf32>
    %102 = vector.broadcast %100 : vector<18x1xf32> to vector<18x18xf32>
    %103 = vector.broadcast %101 : vector<1x18xf32> to vector<18x18xf32>
    %104 = arith.addf %102, %103 : vector<18x18xf32>
    %cst_56 = arith.constant 0.000000e+00 : f32
    %105 = vector.broadcast %cst_56 : f32 to vector<18x18xf32>
    %106 = arith.cmpf ogt, %104, %105 : vector<18x18xf32>
    %cst_57 = arith.constant 2.000000e-01 : f32
    %107 = vector.broadcast %cst_57 : f32 to vector<18x18xf32>
    %108 = arith.mulf %107, %104 : vector<18x18xf32>
    %109 = arith.select %106, %104, %108 : vector<18x18xi1>, vector<18x18xf32>
    %cst_58 = arith.constant 0.000000e+00 : f32
    %110 = vector.broadcast %cst_58 : f32 to vector<18x18xf32>
    %111 = arith.cmpf ogt, %99, %110 : vector<18x18xf32>
    %cst_59 = arith.constant -1.000000e+30 : f32
    %112 = vector.broadcast %cst_59 : f32 to vector<18x18xf32>
    %113 = arith.select %111, %109, %112 : vector<18x18xi1>, vector<18x18xf32>
    %cst_60 = arith.constant dense<0xFF800000> : vector<18xf32>
    %114 = vector.multi_reduction <maximumf>, %113, %cst_60 [1] : vector<18x18xf32> to vector<18xf32>
    %115 = vector.shape_cast %114 : vector<18xf32> to vector<18x1xf32>
    %116 = vector.broadcast %115 : vector<18x1xf32> to vector<18x18xf32>
    %117 = arith.subf %113, %116 : vector<18x18xf32>
    %118 = math.exp %117 : vector<18x18xf32>
    %119 = arith.mulf %118, %99 : vector<18x18xf32>
    %cst_61 = arith.constant dense<0.000000e+00> : vector<18xf32>
    %120 = vector.multi_reduction <add>, %119, %cst_61 [1] : vector<18x18xf32> to vector<18xf32>
    %121 = vector.shape_cast %120 : vector<18xf32> to vector<18x1xf32>
    %cst_62 = arith.constant 9.99999971E-10 : f32
    %122 = vector.broadcast %cst_62 : f32 to vector<18x1xf32>
    %123 = arith.maximumf %121, %122 : vector<18x1xf32>
    %124 = tpu.reciprocal %123 {approx = true} : vector<18x1xf32> -> vector<18x1xf32>
    %125 = vector.broadcast %124 : vector<18x1xf32> to vector<18x18xf32>
    %126 = arith.mulf %119, %125 : vector<18x18xf32>
    %127 = vector.extract_strided_slice %90 {offsets = [0, 0], sizes = [18, 8], strides = [1, 1]} : vector<18x16xf32> to vector<18x8xf32>
    %cst_63 = arith.constant dense<0.000000e+00> : vector<18x8xf32>
    %128 = tpu.matmul %126, %127, %cst_63 {dimension_numbers = #tpu.dot_dimension_numbers<[1], [0], [0], [1], [0, 0, 1, 1], [], []>} : vector<18x18xf32>, vector<18x8xf32>, vector<18x8xf32> -> vector<18x8xf32>
    %129 = vector.extract_strided_slice %96 {offsets = [0, 1], sizes = [18, 1], strides = [1, 1]} : vector<18x2xf32> to vector<18x1xf32>
    %130 = vector.extract_strided_slice %97 {offsets = [1, 0], sizes = [1, 18], strides = [1, 1]} : vector<2x18xf32> to vector<1x18xf32>
    %131 = vector.broadcast %129 : vector<18x1xf32> to vector<18x18xf32>
    %132 = vector.broadcast %130 : vector<1x18xf32> to vector<18x18xf32>
    %133 = arith.addf %131, %132 : vector<18x18xf32>
    %cst_64 = arith.constant 0.000000e+00 : f32
    %134 = vector.broadcast %cst_64 : f32 to vector<18x18xf32>
    %135 = arith.cmpf ogt, %133, %134 : vector<18x18xf32>
    %cst_65 = arith.constant 2.000000e-01 : f32
    %136 = vector.broadcast %cst_65 : f32 to vector<18x18xf32>
    %137 = arith.mulf %136, %133 : vector<18x18xf32>
    %138 = arith.select %135, %133, %137 : vector<18x18xi1>, vector<18x18xf32>
    %cst_66 = arith.constant 0.000000e+00 : f32
    %139 = vector.broadcast %cst_66 : f32 to vector<18x18xf32>
    %140 = arith.cmpf ogt, %99, %139 : vector<18x18xf32>
    %cst_67 = arith.constant -1.000000e+30 : f32
    %141 = vector.broadcast %cst_67 : f32 to vector<18x18xf32>
    %142 = arith.select %140, %138, %141 : vector<18x18xi1>, vector<18x18xf32>
    %cst_68 = arith.constant dense<0xFF800000> : vector<18xf32>
    %143 = vector.multi_reduction <maximumf>, %142, %cst_68 [1] : vector<18x18xf32> to vector<18xf32>
    %144 = vector.shape_cast %143 : vector<18xf32> to vector<18x1xf32>
    %145 = vector.broadcast %144 : vector<18x1xf32> to vector<18x18xf32>
    %146 = arith.subf %142, %145 : vector<18x18xf32>
    %147 = math.exp %146 : vector<18x18xf32>
    %148 = arith.mulf %147, %99 : vector<18x18xf32>
    %cst_69 = arith.constant dense<0.000000e+00> : vector<18xf32>
    %149 = vector.multi_reduction <add>, %148, %cst_69 [1] : vector<18x18xf32> to vector<18xf32>
    %150 = vector.shape_cast %149 : vector<18xf32> to vector<18x1xf32>
    %cst_70 = arith.constant 9.99999971E-10 : f32
    %151 = vector.broadcast %cst_70 : f32 to vector<18x1xf32>
    %152 = arith.maximumf %150, %151 : vector<18x1xf32>
    %153 = tpu.reciprocal %152 {approx = true} : vector<18x1xf32> -> vector<18x1xf32>
    %154 = vector.broadcast %153 : vector<18x1xf32> to vector<18x18xf32>
    %155 = arith.mulf %148, %154 : vector<18x18xf32>
    %156 = vector.extract_strided_slice %90 {offsets = [0, 8], sizes = [18, 8], strides = [1, 1]} : vector<18x16xf32> to vector<18x8xf32>
    %cst_71 = arith.constant dense<0.000000e+00> : vector<18x8xf32>
    %157 = tpu.matmul %155, %156, %cst_71 {dimension_numbers = #tpu.dot_dimension_numbers<[1], [0], [0], [1], [0, 0, 1, 1], [], []>} : vector<18x18xf32>, vector<18x8xf32>, vector<18x8xf32> -> vector<18x8xf32>
    %158 = tpu.concatenate %128, %157 in 1 : vector<18x8xf32>, vector<18x8xf32> -> vector<18x16xf32>
    %c1_72 = arith.constant 1 : index
    %c0_73 = arith.constant 0 : index
    %c0_74 = arith.constant 0 : index
    %159 = vector.load %arg5[%c1_72, %c0_73, %c0_74] : memref<2x1x16xf32, #tpu.memory_space<vmem>>, vector<1x1x16xf32>
    %160 = vector.shape_cast %159 : vector<1x1x16xf32> to vector<1x16xf32>
    %161 = vector.broadcast %160 : vector<1x16xf32> to vector<18x16xf32>
    %162 = arith.addf %158, %161 : vector<18x16xf32>
    %cst_75 = arith.constant 0.000000e+00 : f32
    %163 = vector.broadcast %cst_75 : f32 to vector<18x16xf32>
    %164 = arith.cmpf ogt, %162, %163 : vector<18x16xf32>
    %cst_76 = arith.constant 0.000000e+00 : f32
    %165 = vector.broadcast %cst_76 : f32 to vector<18x16xf32>
    %166 = arith.minimumf %162, %165 : vector<18x16xf32>
    %167 = math.exp %166 : vector<18x16xf32>
    %cst_77 = arith.constant 1.000000e+00 : f32
    %168 = vector.broadcast %cst_77 : f32 to vector<18x16xf32>
    %169 = arith.subf %167, %168 : vector<18x16xf32>
    %170 = arith.select %164, %162, %169 : vector<18x16xi1>, vector<18x16xf32>
    %c0_78 = arith.constant 0 : index
    %c0_79 = arith.constant 0 : index
    %171 = vector.load %arg8[%c0_78, %c0_79] : memref<16x128xf32, #tpu.memory_space<vmem>>, vector<16x128xf32>
    %cst_80 = arith.constant dense<0.000000e+00> : vector<18x128xf32>
    %172 = tpu.matmul %87, %171, %cst_80 {dimension_numbers = #tpu.dot_dimension_numbers<[1], [0], [0], [1], [0, 0, 1, 1], [], []>} : vector<18x16xf32>, vector<16x128xf32>, vector<18x128xf32> -> vector<18x128xf32>
    %c0_81 = arith.constant 0 : index
    %c0_82 = arith.constant 0 : index
    %173 = vector.load %arg9[%c0_81, %c0_82] : memref<1x128xf32, #tpu.memory_space<vmem>>, vector<1x128xf32>
    %174 = vector.broadcast %173 : vector<1x128xf32> to vector<18x128xf32>
    %175 = arith.addf %172, %174 : vector<18x128xf32>
    %176 = math.tanh %175 : vector<18x128xf32>
    %c0_83 = arith.constant 0 : index
    %c0_84 = arith.constant 0 : index
    %177 = vector.load %arg10[%c0_83, %c0_84] : memref<1x128xf32, #tpu.memory_space<vmem>>, vector<1x128xf32>
    %178 = vector.broadcast %177 : vector<1x128xf32> to vector<18x128xf32>
    %179 = arith.mulf %176, %178 : vector<18x128xf32>
    %cst_85 = arith.constant dense<0.000000e+00> : vector<18xf32>
    %180 = vector.multi_reduction <add>, %179, %cst_85 [1] : vector<18x128xf32> to vector<18xf32>
    %181 = vector.shape_cast %180 : vector<18xf32> to vector<18x1xf32>
    %cst_86 = arith.constant dense<0.000000e+00> : vector<1xf32>
    %182 = vector.multi_reduction <add>, %181, %cst_86 [0] : vector<18x1xf32> to vector<1xf32>
    %183 = vector.shape_cast %182 : vector<1xf32> to vector<1x1xf32>
    %cst_87 = arith.constant 1.800000e+01 : f32
    %184 = vector.broadcast %cst_87 : f32 to vector<1x1xf32>
    %185 = arith.divf %183, %184 : vector<1x1xf32>
    %c0_88 = arith.constant 0 : index
    %c0_89 = arith.constant 0 : index
    %186 = vector.load %arg8[%c0_88, %c0_89] : memref<16x128xf32, #tpu.memory_space<vmem>>, vector<16x128xf32>
    %cst_90 = arith.constant dense<0.000000e+00> : vector<18x128xf32>
    %187 = tpu.matmul %170, %186, %cst_90 {dimension_numbers = #tpu.dot_dimension_numbers<[1], [0], [0], [1], [0, 0, 1, 1], [], []>} : vector<18x16xf32>, vector<16x128xf32>, vector<18x128xf32> -> vector<18x128xf32>
    %c0_91 = arith.constant 0 : index
    %c0_92 = arith.constant 0 : index
    %188 = vector.load %arg9[%c0_91, %c0_92] : memref<1x128xf32, #tpu.memory_space<vmem>>, vector<1x128xf32>
    %189 = vector.broadcast %188 : vector<1x128xf32> to vector<18x128xf32>
    %190 = arith.addf %187, %189 : vector<18x128xf32>
    %191 = math.tanh %190 : vector<18x128xf32>
    %c0_93 = arith.constant 0 : index
    %c0_94 = arith.constant 0 : index
    %192 = vector.load %arg10[%c0_93, %c0_94] : memref<1x128xf32, #tpu.memory_space<vmem>>, vector<1x128xf32>
    %193 = vector.broadcast %192 : vector<1x128xf32> to vector<18x128xf32>
    %194 = arith.mulf %191, %193 : vector<18x128xf32>
    %cst_95 = arith.constant dense<0.000000e+00> : vector<18xf32>
    %195 = vector.multi_reduction <add>, %194, %cst_95 [1] : vector<18x128xf32> to vector<18xf32>
    %196 = vector.shape_cast %195 : vector<18xf32> to vector<18x1xf32>
    %cst_96 = arith.constant dense<0.000000e+00> : vector<1xf32>
    %197 = vector.multi_reduction <add>, %196, %cst_96 [0] : vector<18x1xf32> to vector<1xf32>
    %198 = vector.shape_cast %197 : vector<1xf32> to vector<1x1xf32>
    %cst_97 = arith.constant 1.800000e+01 : f32
    %199 = vector.broadcast %cst_97 : f32 to vector<1x1xf32>
    %200 = arith.divf %198, %199 : vector<1x1xf32>
    %201 = arith.maximumf %185, %200 : vector<1x1xf32>
    %202 = arith.subf %185, %201 : vector<1x1xf32>
    %203 = math.exp %202 : vector<1x1xf32>
    %204 = arith.subf %200, %201 : vector<1x1xf32>
    %205 = math.exp %204 : vector<1x1xf32>
    %206 = arith.addf %203, %205 : vector<1x1xf32>
    %207 = arith.divf %203, %206 : vector<1x1xf32>
    %208 = vector.broadcast %207 : vector<1x1xf32> to vector<18x16xf32>
    %209 = arith.mulf %208, %87 : vector<18x16xf32>
    %210 = arith.divf %205, %206 : vector<1x1xf32>
    %211 = vector.broadcast %210 : vector<1x1xf32> to vector<18x16xf32>
    %212 = arith.mulf %211, %170 : vector<18x16xf32>
    %213 = arith.addf %209, %212 : vector<18x16xf32>
    %c0_98 = arith.constant 0 : index
    %c0_99 = arith.constant 0 : index
    %214 = vector.load %arg11[%c0_98, %c0_99] : memref<16x16xf32, #tpu.memory_space<vmem>>, vector<16x16xf32>
    %cst_100 = arith.constant dense<0.000000e+00> : vector<18x16xf32>
    %215 = tpu.matmul %213, %214, %cst_100 {dimension_numbers = #tpu.dot_dimension_numbers<[1], [0], [0], [1], [0, 0, 1, 1], [], []>} : vector<18x16xf32>, vector<16x16xf32>, vector<18x16xf32> -> vector<18x16xf32>
    %c0_101 = arith.constant 0 : index
    %c0_102 = arith.constant 0 : index
    %216 = vector.load %arg12[%c0_101, %c0_102] : memref<1x16xf32, #tpu.memory_space<vmem>>, vector<1x16xf32>
    %217 = vector.broadcast %216 : vector<1x16xf32> to vector<18x16xf32>
    %218 = arith.addf %215, %217 : vector<18x16xf32>
    %219 = tpu.iota {dimensions = array<i32: 0>} : vector<18x1xi32>
    %c10_i32 = arith.constant 10 : i32
    %220 = vector.broadcast %c10_i32 : i32 to vector<18x1xi32>
    %221 = arith.cmpi slt, %219, %220 : vector<18x1xi32>
    %222 = arith.extui %221 : vector<18x1xi1> to vector<18x1xi32>
    %223 = arith.sitofp %222 : vector<18x1xi32> to vector<18x1xf32>
    %cst_103 = arith.constant 1.000000e+00 : f32
    %224 = vector.broadcast %cst_103 : f32 to vector<18x1xf32>
    %225 = arith.subf %224, %223 : vector<18x1xf32>
    %c0_104 = arith.constant 0 : index
    %c0_105 = arith.constant 0 : index
    %226 = vector.load %arg13[%c0_104, %c0_105] : memref<16x16xf32, #tpu.memory_space<vmem>>, vector<16x16xf32>
    %c0_106 = arith.constant 0 : index
    %c0_107 = arith.constant 0 : index
    %227 = vector.load %arg14[%c0_106, %c0_107] : memref<1x16xf32, #tpu.memory_space<vmem>>, vector<1x16xf32>
    %228 = vector.broadcast %223 : vector<18x1xf32> to vector<18x16xf32>
    %229 = arith.mulf %218, %228 : vector<18x16xf32>
    %cst_108 = arith.constant dense<0.000000e+00> : vector<16xf32>
    %230 = vector.multi_reduction <add>, %229, %cst_108 [0] : vector<18x16xf32> to vector<16xf32>
    %231 = vector.shape_cast %230 : vector<16xf32> to vector<1x16xf32>
    %cst_109 = arith.constant 1.000000e+01 : f32
    %232 = vector.broadcast %cst_109 : f32 to vector<1x16xf32>
    %233 = arith.divf %231, %232 : vector<1x16xf32>
    %cst_110 = arith.constant dense<0.000000e+00> : vector<1x16xf32>
    %234 = tpu.matmul %233, %226, %cst_110 {dimension_numbers = #tpu.dot_dimension_numbers<[1], [0], [0], [1], [0, 0, 1, 1], [], []>} : vector<1x16xf32>, vector<16x16xf32>, vector<1x16xf32> -> vector<1x16xf32>
    %235 = arith.addf %234, %227 : vector<1x16xf32>
    %236 = math.tanh %235 : vector<1x16xf32>
    %237 = vector.broadcast %236 : vector<1x16xf32> to vector<18x16xf32>
    %238 = arith.mulf %218, %237 : vector<18x16xf32>
    %cst_111 = arith.constant dense<0.000000e+00> : vector<18xf32>
    %239 = vector.multi_reduction <add>, %238, %cst_111 [1] : vector<18x16xf32> to vector<18xf32>
    %240 = vector.shape_cast %239 : vector<18xf32> to vector<18x1xf32>
    %cst_112 = arith.constant 0.000000e+00 : f32
    %241 = vector.broadcast %cst_112 : f32 to vector<18x1xf32>
    %242 = arith.subf %241, %240 : vector<18x1xf32>
    %243 = math.exp %242 : vector<18x1xf32>
    %cst_113 = arith.constant 1.000000e+00 : f32
    %244 = vector.broadcast %cst_113 : f32 to vector<18x1xf32>
    %245 = arith.addf %244, %243 : vector<18x1xf32>
    %cst_114 = arith.constant 1.000000e+00 : f32
    %246 = vector.broadcast %cst_114 : f32 to vector<18x1xf32>
    %247 = arith.divf %246, %245 : vector<18x1xf32>
    %248 = arith.mulf %247, %223 : vector<18x1xf32>
    %249 = vector.broadcast %248 : vector<18x1xf32> to vector<18x16xf32>
    %250 = arith.mulf %249, %218 : vector<18x16xf32>
    %cst_115 = arith.constant dense<0.000000e+00> : vector<16xf32>
    %251 = vector.multi_reduction <add>, %250, %cst_115 [0] : vector<18x16xf32> to vector<16xf32>
    %252 = vector.shape_cast %251 : vector<16xf32> to vector<1x16xf32>
    %c0_116 = arith.constant 0 : index
    %c0_117 = arith.constant 0 : index
    %253 = vector.load %arg15[%c0_116, %c0_117] : memref<16x16xf32, #tpu.memory_space<vmem>>, vector<16x16xf32>
    %c0_118 = arith.constant 0 : index
    %c0_119 = arith.constant 0 : index
    %254 = vector.load %arg16[%c0_118, %c0_119] : memref<1x16xf32, #tpu.memory_space<vmem>>, vector<1x16xf32>
    %255 = vector.broadcast %225 : vector<18x1xf32> to vector<18x16xf32>
    %256 = arith.mulf %218, %255 : vector<18x16xf32>
    %cst_120 = arith.constant dense<0.000000e+00> : vector<16xf32>
    %257 = vector.multi_reduction <add>, %256, %cst_120 [0] : vector<18x16xf32> to vector<16xf32>
    %258 = vector.shape_cast %257 : vector<16xf32> to vector<1x16xf32>
    %cst_121 = arith.constant 8.000000e+00 : f32
    %259 = vector.broadcast %cst_121 : f32 to vector<1x16xf32>
    %260 = arith.divf %258, %259 : vector<1x16xf32>
    %cst_122 = arith.constant dense<0.000000e+00> : vector<1x16xf32>
    %261 = tpu.matmul %260, %253, %cst_122 {dimension_numbers = #tpu.dot_dimension_numbers<[1], [0], [0], [1], [0, 0, 1, 1], [], []>} : vector<1x16xf32>, vector<16x16xf32>, vector<1x16xf32> -> vector<1x16xf32>
    %262 = arith.addf %261, %254 : vector<1x16xf32>
    %263 = math.tanh %262 : vector<1x16xf32>
    %264 = vector.broadcast %263 : vector<1x16xf32> to vector<18x16xf32>
    %265 = arith.mulf %218, %264 : vector<18x16xf32>
    %cst_123 = arith.constant dense<0.000000e+00> : vector<18xf32>
    %266 = vector.multi_reduction <add>, %265, %cst_123 [1] : vector<18x16xf32> to vector<18xf32>
    %267 = vector.shape_cast %266 : vector<18xf32> to vector<18x1xf32>
    %cst_124 = arith.constant 0.000000e+00 : f32
    %268 = vector.broadcast %cst_124 : f32 to vector<18x1xf32>
    %269 = arith.subf %268, %267 : vector<18x1xf32>
    %270 = math.exp %269 : vector<18x1xf32>
    %cst_125 = arith.constant 1.000000e+00 : f32
    %271 = vector.broadcast %cst_125 : f32 to vector<18x1xf32>
    %272 = arith.addf %271, %270 : vector<18x1xf32>
    %cst_126 = arith.constant 1.000000e+00 : f32
    %273 = vector.broadcast %cst_126 : f32 to vector<18x1xf32>
    %274 = arith.divf %273, %272 : vector<18x1xf32>
    %275 = arith.mulf %274, %225 : vector<18x1xf32>
    %276 = vector.broadcast %275 : vector<18x1xf32> to vector<18x16xf32>
    %277 = arith.mulf %276, %218 : vector<18x16xf32>
    %cst_127 = arith.constant dense<0.000000e+00> : vector<16xf32>
    %278 = vector.multi_reduction <add>, %277, %cst_127 [0] : vector<18x16xf32> to vector<16xf32>
    %279 = vector.shape_cast %278 : vector<16xf32> to vector<1x16xf32>
    %c0_128 = arith.constant 0 : index
    %c0_129 = arith.constant 0 : index
    %280 = vector.load %arg18[%c0_128, %c0_129] : memref<16x256xf32, #tpu.memory_space<vmem>>, vector<16x256xf32>
    %cst_130 = arith.constant dense<0.000000e+00> : vector<1x256xf32>
    %281 = tpu.matmul %279, %280, %cst_130 {dimension_numbers = #tpu.dot_dimension_numbers<[1], [0], [0], [1], [0, 0, 1, 1], [], []>} : vector<1x16xf32>, vector<16x256xf32>, vector<1x256xf32> -> vector<1x256xf32>
    %c0_131 = arith.constant 0 : index
    %c0_132 = arith.constant 0 : index
    %282 = vector.load %arg17[%c0_131, %c0_132] : memref<16x256xf32, #tpu.memory_space<vmem>>, vector<16x256xf32>
    %cst_133 = arith.constant dense<0.000000e+00> : vector<1x256xf32>
    %283 = tpu.matmul %252, %282, %cst_133 {dimension_numbers = #tpu.dot_dimension_numbers<[1], [0], [0], [1], [0, 0, 1, 1], [], []>} : vector<1x16xf32>, vector<16x256xf32>, vector<1x256xf32> -> vector<1x256xf32>
    %284 = arith.mulf %283, %281 : vector<1x256xf32>
    %c0_134 = arith.constant 0 : index
    %c0_135 = arith.constant 0 : index
    %285 = vector.load %arg19[%c0_134, %c0_135] : memref<256x16xf32, #tpu.memory_space<vmem>>, vector<256x16xf32>
    %cst_136 = arith.constant dense<0.000000e+00> : vector<1x16xf32>
    %286 = tpu.matmul %284, %285, %cst_136 {dimension_numbers = #tpu.dot_dimension_numbers<[1], [0], [0], [1], [0, 0, 1, 1], [], []>} : vector<1x256xf32>, vector<256x16xf32>, vector<1x16xf32> -> vector<1x16xf32>
    %c0_137 = arith.constant 0 : index
    %c0_138 = arith.constant 0 : index
    %287 = vector.load %arg20[%c0_137, %c0_138] : memref<16x16xf32, #tpu.memory_space<vmem>>, vector<16x16xf32>
    %cst_139 = arith.constant dense<0.000000e+00> : vector<1x16xf32>
    %288 = tpu.matmul %252, %287, %cst_139 {dimension_numbers = #tpu.dot_dimension_numbers<[1], [0], [0], [1], [0, 0, 1, 1], [], []>} : vector<1x16xf32>, vector<16x16xf32>, vector<1x16xf32> -> vector<1x16xf32>
    %c0_140 = arith.constant 0 : index
    %c0_141 = arith.constant 0 : index
    %289 = vector.load %arg21[%c0_140, %c0_141] : memref<16x16xf32, #tpu.memory_space<vmem>>, vector<16x16xf32>
    %cst_142 = arith.constant dense<0.000000e+00> : vector<1x16xf32>
    %290 = tpu.matmul %279, %289, %cst_142 {dimension_numbers = #tpu.dot_dimension_numbers<[1], [0], [0], [1], [0, 0, 1, 1], [], []>} : vector<1x16xf32>, vector<16x16xf32>, vector<1x16xf32> -> vector<1x16xf32>
    %291 = arith.addf %288, %290 : vector<1x16xf32>
    %c0_143 = arith.constant 0 : index
    %c0_144 = arith.constant 0 : index
    %292 = vector.load %arg22[%c0_143, %c0_144] : memref<1x16xf32, #tpu.memory_space<vmem>>, vector<1x16xf32>
    %293 = arith.addf %291, %292 : vector<1x16xf32>
    %294 = arith.addf %286, %293 : vector<1x16xf32>
    %295 = math.tanh %294 : vector<1x16xf32>
    %c0_145 = arith.constant 0 : index
    %c0_146 = arith.constant 0 : index
    %296 = vector.load %arg23[%c0_145, %c0_146] : memref<16x8xf32, #tpu.memory_space<vmem>>, vector<16x8xf32>
    %cst_147 = arith.constant dense<0.000000e+00> : vector<1x8xf32>
    %297 = tpu.matmul %295, %296, %cst_147 {dimension_numbers = #tpu.dot_dimension_numbers<[1], [0], [0], [1], [0, 0, 1, 1], [], []>} : vector<1x16xf32>, vector<16x8xf32>, vector<1x8xf32> -> vector<1x8xf32>
    %c0_148 = arith.constant 0 : index
    %c0_149 = arith.constant 0 : index
    %298 = vector.load %arg24[%c0_148, %c0_149] : memref<1x8xf32, #tpu.memory_space<vmem>>, vector<1x8xf32>
    %299 = arith.addf %297, %298 : vector<1x8xf32>
    %cst_150 = arith.constant 0.000000e+00 : f32
    %300 = vector.broadcast %cst_150 : f32 to vector<1x8xf32>
    %301 = arith.maximumf %299, %300 : vector<1x8xf32>
    %c0_151 = arith.constant 0 : index
    %c0_152 = arith.constant 0 : index
    %302 = vector.load %arg25[%c0_151, %c0_152] : memref<8x4xf32, #tpu.memory_space<vmem>>, vector<8x4xf32>
    %cst_153 = arith.constant dense<0.000000e+00> : vector<1x4xf32>
    %303 = tpu.matmul %301, %302, %cst_153 {dimension_numbers = #tpu.dot_dimension_numbers<[1], [0], [0], [1], [0, 0, 1, 1], [], []>} : vector<1x8xf32>, vector<8x4xf32>, vector<1x4xf32> -> vector<1x4xf32>
    %c0_154 = arith.constant 0 : index
    %c0_155 = arith.constant 0 : index
    %304 = vector.load %arg26[%c0_154, %c0_155] : memref<1x4xf32, #tpu.memory_space<vmem>>, vector<1x4xf32>
    %305 = arith.addf %303, %304 : vector<1x4xf32>
    %cst_156 = arith.constant 0.000000e+00 : f32
    %306 = vector.broadcast %cst_156 : f32 to vector<1x4xf32>
    %307 = arith.maximumf %305, %306 : vector<1x4xf32>
    %c0_157 = arith.constant 0 : index
    %c0_158 = arith.constant 0 : index
    %308 = vector.load %arg27[%c0_157, %c0_158] : memref<4x1xf32, #tpu.memory_space<vmem>>, vector<4x1xf32>
    %cst_159 = arith.constant dense<0.000000e+00> : vector<1x1xf32>
    %309 = tpu.matmul %307, %308, %cst_159 {dimension_numbers = #tpu.dot_dimension_numbers<[1], [0], [0], [1], [0, 0, 1, 1], [], []>} : vector<1x4xf32>, vector<4x1xf32>, vector<1x1xf32> -> vector<1x1xf32>
    %c0_160 = arith.constant 0 : index
    %c0_161 = arith.constant 0 : index
    %310 = vector.load %arg28[%c0_160, %c0_161] : memref<1x1xf32, #tpu.memory_space<vmem>>, vector<1x1xf32>
    %311 = arith.addf %309, %310 : vector<1x1xf32>
    %c0_162 = arith.constant 0 : index
    %c0_163 = arith.constant 0 : index
    %312 = vector.load %arg29[%c0_162, %c0_163] : memref<1x1xf32, #tpu.memory_space<vmem>>, vector<1x1xf32>
    tpu.vector_store %arg29[%c0_162, %c0_163], %311 {strides = array<i32>} : memref<1x1xf32, #tpu.memory_space<vmem>>, vector<1x1xf32>,
    return
  }
}

</mosaic_0001>

<bundles_post_ra>
// kernel: hsgmp_forward.1
= control target key start
LH: loop header
LB: loop body
LE: loop exit
PB: predicated region body
PF: predicated region fallthrough
CT: control target
= control target key end

     0   :  { %s3563_s6 = smov 1   ;;  %s3564_s10 = smov 2   ;;  %s4356_s0 = inlined_call_operand.smem [shape: u32[30], index: -1, kind: input, shape index: {}] }
   0x1   :  { %s3607_s5 = sld [smem:[%s4356_s0]]   ;;  %s3565_s14 = smov 3  }
   0x2   :  { %s3612_s9 = sld [smem:[%s4356_s0 + %s3563_s6]]   ;;  %s3566_s18 = smov 4  }
   0x3   :  { %s3617_s13 = sld [smem:[%s4356_s0 + %s3564_s10]]   ;;  %s3567_s22 = smov 5  }
   0x4   :  { %s3622_s17 = sld [smem:[%s4356_s0 + %s3565_s14]]   ;;  %s3568_s26 = smov 6  }
   0x5   :  { %s3627_s21 = sld [smem:[%s4356_s0 + %s3566_s18]]   ;;  %s3569_s30 = smov 7  }
   0x6   :  { %s3632_s25 = sld [smem:[%s4356_s0 + %s3567_s22]]   ;;  %s3570_s4 = smov 8  }
   0x7   :  { %s3637_s29 = sld [smem:[%s4356_s0 + %s3568_s26]]   ;;  %s3571_s10 = smov 9  }
   0x8   :  { %s3642_s3 = sld [smem:[%s4356_s0 + %s3569_s30]]   ;;  %s3572_s15 = smov 10  }
   0x9   :  { %s3647_s8 = sld [smem:[%s4356_s0 + %s3570_s4]]   ;;  %s3573_s20 = smov 11  }
   0xa   :  { %s3652_s14 = sld [smem:[%s4356_s0 + %s3571_s10]]   ;;  %s3574_s26 = smov 12  }
   0xb   :  { %s3657_s19 = sld [smem:[%s4356_s0 + %s3572_s15]]   ;;  %s3575_s1 = smov 13  }
   0xc   :  { %s3662_s24 = sld [smem:[%s4356_s0 + %s3573_s20]]   ;;  %s3576_s7 = smov 14  }
   0xd   :  { %s3667_s30 = sld [smem:[%s4356_s0 + %s3574_s26]]   ;;  %s3577_s15 = smov 15  }
   0xe   :  { %s3672_s6 = sld [smem:[%s4356_s0 + %s3575_s1]]   ;;  %s3578_s22 = smov 16  }
   0xf   :  { %s3677_s12 = sld [smem:[%s4356_s0 + %s3576_s7]]   ;;  %s3579_s28 = smov 17  }
  0x10   :  { %s3682_s20 = sld [smem:[%s4356_s0 + %s3577_s15]]   ;;  %s3580_s7 = smov 18  }
  0x11   :  { %s3687_s27 = sld [smem:[%s4356_s0 + %s3578_s22]]   ;;  %s3581_s15 = smov 19  }
  0x12   :  { %s3692_s4 = sld [smem:[%s4356_s0 + %s3579_s28]]   ;;  %s3582_s22 = smov 20  }
  0x13   :  { %s3583_s28 = smov 21   ;;  %s3591_s1 = smov 29  }
  0x15   :  { %4364 = sst [smem:[#allocation6_spill]] %s3677_s12 }
  0x16   :  { %4365 = sst [smem:[#allocation7_spill]] %s3682_s20 }
  0x17   :  { %4366 = sst [smem:[#allocation8_spill]] %s3687_s27 }
  0x18   :  { %4367 = sst [smem:[#allocation9_spill]] %s3692_s4 }
  0x19   :  { %s3697_s12 = sld [smem:[%s4356_s0 + %s3580_s7]]   ;;  %s3584_s7 = smov 22  }
  0x1a   :  { %s3702_s20 = sld [smem:[%s4356_s0 + %s3581_s15]]   ;;  %s3585_s15 = smov 23  }
  0x1b   :  { %s3707_s27 = sld [smem:[%s4356_s0 + %s3582_s22]]   ;;  %s3586_s22 = smov 24  }
  0x1c   :  { %s3712_s4 = sld [smem:[%s4356_s0 + %s3583_s28]]   ;;  %s3587_s28 = smov 25  }
  0x1f   :  { %4368 = sst [smem:[#allocation10_spill]] %s3697_s12 }
  0x20   :  { %4369 = sst [smem:[#allocation11_spill]] %s3702_s20 }
  0x21   :  { %4370 = sst [smem:[#allocation12_spill]] %s3707_s27 }
  0x22   :  { %4371 = sst [smem:[#allocation13_spill]] %s3712_s4 }
  0x23   :  { %s3717_s12 = sld [smem:[%s4356_s0 + %s3584_s7]]   ;;  %s3588_s7 = smov 26  }
  0x24   :  { %s3722_s20 = sld [smem:[%s4356_s0 + %s3585_s15]]   ;;  %s3589_s15 = smov 27  }
  0x25   :  { %s3727_s27 = sld [smem:[%s4356_s0 + %s3586_s22]]   ;;  %s3590_s22 = smov 28  }
  0x26   :  { %s3732_s4 = sld [smem:[%s4356_s0 + %s3587_s28]]  }
  0x29   :  { %4372 = sst [smem:[#allocation14_spill]] %s3717_s12 }
  0x2a   :  { %4373 = sst [smem:[#allocation15_spill]] %s3722_s20 }
  0x2b   :  { %4374 = sst [smem:[#allocation16_spill]] %s3727_s27 }
  0x2c   :  { %4375 = sst [smem:[#allocation17_spill]] %s3732_s4 }
  0x2d   :  { %s3737_s12 = sld [smem:[%s4356_s0 + %s3588_s7]]  }
  0x2e   :  { %s3742_s20 = sld [smem:[%s4356_s0 + %s3589_s15]]  }
  0x2f   :  { %s2935_s27 = sld [smem:[%s4356_s0 + %s3590_s22]]  }
  0x30   :  { %s3750_s4 = sld [smem:[%s4356_s0 + %s3591_s1]]  }
  0x35   :  { %v64_v0 = vstv %s2935_s27 }
  0x36   :  { %65 = vst [vmem:[#allocation2] sm:$0x1] %v64_v0 }
  0x37   :  { %v133_v1 = vld [vmem:[%s3612_s9 + $0x28] sm:$0x1f]  ;;  %vm147_vm0 = vcmask 1044480   ;;  %v3592_v2 = vmov 0.0   ;;  %v132_v3 = vld [vmem:[%s3612_s9 + $0x20] sm:$0xff]  ;;  %vm3593_vm1 = vmmov 0  }
  0x38   :  { %3148 = vmatprep.subr.mxu0 %v3592_v2  ;;  %3169 = vmatprep.subr.mxu1 %v3592_v2  ;;  %v131_v4 = vld [vmem:[%s3612_s9 + $0x18] sm:$0xff] }
  0x39   :  { %3149 = vmatpush3.msk.msra.mxu0 %vm147_vm0, %v133_v1  ;;  %3160 = vmatprep.mubr.msk.f32.mxu0 %vm3593_vm1, %v3592_v2 }
  0x3a   :  { %3150 = vmatprep.subr.mxu0 %v3592_v2  ;;  %3173 = vmatprep.mubr.msk.f32.mxu1 %vm3593_vm1, %v3592_v2 }
  0x3b   :  { %66 = vsyncpa [#allocation4], 0  ;;  %3151 = vmatpush3.msra.mxu0 %v132_v3  ;;  %v130_v5 = vld [vmem:[%s3612_s9 + $0x10] sm:$0xff]  ;;  %v129_v6 = vld [vmem:[%s3612_s9 + $0x8] sm:$0xff]  ;;  %vm137_vm2 = vcmask 367616   ;;  %vm233_vm3 = vcmask 130048   ;;  %v546_v48 = vlaneseq }
  0x3c   :  { %3152 = vmatprep.subr.mxu0 %v3592_v2  ;;  %v128_v7 = vld [vmem:[%s3612_s9] sm:$0xff]  ;;  %v126_v9 = vld [vmem:[%s3607_s5 + $0x8] sm:$0xff]  ;;  %v127_v10 = vld [vmem:[%s3607_s5 + $0x10] sm:$0x3]  ;;  %vm618_vm4 = vcmask 1041408   ;;  %v3594_v35 = vmov 0  }
  0x3d   :  { %3153 = vmatpush3.msra.mxu0 %v131_v4  ;;  %v125_v8 = vld [vmem:[%s3607_s5] sm:$0xff]  ;;  %v232_v11 = vld [vmem:[%s3627_s21 + $0x8] sm:$0xff]  ;;  %v136_v23 = vld [vmem:[%s3617_s13 + $0x10] sm:$0x3]  ;;  %3427 = vset.pattern.permute.xlu0 %v3594_v35  ;;  %v3860_v49 = vshrl.u32 %v546_v48, 7  ;;  %vm568_vm8 = vcmask 146432  }
  0x3e   :  { %3154 = vmatprep.subr.mxu0 %v3592_v2  ;;  %3170 = vmatpush3.msra.mxu1 %v232_v11  ;;  %v231_v12 = vld [vmem:[%s3627_s21] sm:$0xff]  ;;  %v324_v16 = vld [vmem:[%s3637_s29 + $0x8] sm:$0xff]  ;;  %v3880_v4 = vld [vmem:[%s3622_s17 + $0x10] sm:$0x3]  ;;  %vm575_vm12 = vcmask 140288   ;;  %v3595_v11 = vmov 1  }
  0x3f   :  { %3155 = vmatpush3.msra.mxu0 %v130_v5  ;;  %3171 = vmatprep.subr.mxu1 %v3592_v2  ;;  %v134_v13 = vld [vmem:[%s3617_s13] sm:$0xff]  ;;  %v135_v18 = vld [vmem:[%s3617_s13 + $0x8] sm:$0xff]  ;;  %v3863_v52 = vsub.s32 0, %v3860_v49  ;;  %vm564_vm11 = vcmp.gt.f32.partialorder %v3880_v4, 0.0  ;;  %s3596_s0 = smov 120   ;;  %s3597_s5 = smov 8  }
  0x40   :  { %3156 = vmatprep.subr.mxu0 %v3592_v2  ;;  %3172 = vmatpush3.msra.mxu1 %v231_v12  ;;  %v323_v19 = vld [vmem:[%s3637_s29] sm:$0xff]  ;;  %v415_v27 = vld [vmem:[%s3642_s3 + $0x8] sm:$0xff]  ;;  %s4376_s9 = sld [smem:[#allocation7_spill]] }
  0x41   :  { %3157 = vmatpush3.msra.mxu0 %v129_v6  ;;  %3182 = vmatprep.subr.mxu1 %v3592_v2  ;;  %v414_v29 = vld [vmem:[%s3642_s3] sm:$0xff]  ;;  %v3874_v60 = vld [vmem:[%s3622_s17 + $0x8] sm:$0xff]  ;;  %s4377_s13 = sld [smem:[#allocation6_spill]] }
  0x42   :  { %3158 = vmatprep.subr.mxu0 %v3592_v2  ;;  %3428 = vset.pattern.permute.xlu1 %v3594_v35  ;;  %v3870_v55 = vld [vmem:[%s3622_s17] sm:$0xff]  ;;  %vm563_vm9 = vcmp.gt.f32.partialorder %v3874_v60, 0.0 }
  0x43   :  { %3159 = vmatpush3.msra.mxu0 %v128_v7  ;;  %vm562_vm5 = vcmp.gt.f32.partialorder %v3870_v55, 0.0 }
  0x44   :  { %3161 = vmatmul.mubr.msk.f32.vlgmr.msra.gmra.mxu0 %vm137_vm2, %v125_v8  ;;  %3223 = vmatprep.subr.mxu0 %v3592_v2 }
  0x45   :  { %3163 = vmatprep.mubr.msk.f32.mxu0 %vm3593_vm1, %v3592_v2 }
  0x48   :  { %3164 = vmatmul.mubr.msk.f32.gmra.mxu0 %vm137_vm2, %v126_v9 }
  0x49   :  { %3166 = vmatprep.mubr.msk.f32.mxu0 %vm3593_vm1, %v3592_v2 }
  0x4c   :  { %3167 = vmatmul.mubr.msk.f32.gmra.mxu0 %vm137_vm2, %v127_v10 }
  0x4d   :  { %3229 = vmatprep.mubr.msk.f32.mxu0 %vm3593_vm1, %v3592_v2 }
 0x104   :  { %v217_v14 = vpop.f32.mrf.mxu0 }
 0x105   :  { %v3784_v15 = vadd.f32 %v217_v14, %v134_v13 }
 0x106   :  { %v3162_v17 = vpop.f32.mrf.mxu0 }
 0x107   :  { %3174 = vmatmul.mubr.msk.f32.vlgmr.msra.gmra.mxu1 %vm233_vm3, %v3784_v15 }
 0x108   :  { %v222_v20 = vpop.f32.mrf.mxu0  ;;  %3176 = vmatprep.mubr.msk.f32.mxu1 %vm3593_vm1, %v3592_v2  ;;  %3183 = vmatpush3.msra.mxu1 %v324_v16 }
 0x109   :  { %v3793_v21 = vadd.f32 %v222_v20, %v135_v18  ;;  %3184 = vmatprep.subr.mxu1 %v3592_v2 }
 0x10a   :  { %v3165_v22 = vpop.f32.mrf.mxu0  ;;  %3185 = vmatpush3.msra.mxu1 %v323_v19 }
 0x10b   :  { %3177 = vmatmul.mubr.msk.f32.gmra.mxu1 %vm233_vm3, %v3793_v21  ;;  %3195 = vmatprep.subr.mxu1 %v3592_v2 }
 0x10c   :  { %v227_v24 = vpop.f32.mrf.mxu0  ;;  %3179 = vmatprep.mubr.msk.f32.mxu1 %vm3593_vm1, %v3592_v2 }
 0x10d   :  { %v3802_v25 = vadd.f32 %v227_v24, %v136_v23 }
 0x10e   :  { %v3168_v26 = vpop.f32.mrf.mxu0 }
 0x10f   :  { %3180 = vmatmul.mubr.msk.f32.gmra.mxu1 %vm233_vm3, %v3802_v25 }
 0x110   :  { %3186 = vmatprep.mubr.msk.f32.mxu1 %vm3593_vm1, %v3592_v2 }
 0x1c7   :  { %v3809_v28 = vpop.f32.mrf.mxu1 }
 0x1c8   :  { %3187 = vmatmul.mubr.msk.f32.vlgmr.msra.gmra.mxu1 %vm233_vm3, %v3809_v28 }
 0x1c9   :  { %v3175_v30 = vpop.f32.mrf.mxu1  ;;  %3196 = vmatpush3.msra.mxu1 %v415_v27  ;;  %3189 = vmatprep.mubr.msk.f32.mxu1 %vm3593_vm1, %v3592_v2 }
 0x1ca   :  { %3197 = vmatprep.subr.mxu1 %v3592_v2 }
 0x1cb   :  { %v3817_v31 = vpop.f32.mrf.mxu1  ;;  %3198 = vmatpush3.msra.mxu1 %v414_v29 }
 0x1cc   :  { %3190 = vmatmul.mubr.msk.f32.gmra.mxu1 %vm233_vm3, %v3817_v31  ;;  %3208 = vmatprep.subr.mxu1 %v3592_v2 }
 0x1cd   :  { %v3178_v32 = vpop.f32.mrf.mxu1  ;;  %3192 = vmatprep.mubr.msk.f32.mxu1 %vm3593_vm1, %v3592_v2 }
 0x1cf   :  { %v3824_v33 = vpop.f32.mrf.mxu1 }
 0x1d0   :  { %3193 = vmatmul.mubr.msk.f32.gmra.mxu1 %vm233_vm3, %v3824_v33 }
 0x1d1   :  { %v3181_v34 = vpop.f32.mrf.mxu1  ;;  %3199 = vmatprep.mubr.msk.f32.mxu1 %vm3593_vm1, %v3592_v2 }
 0x1d4   :  { %3200 = vmatmul.mubr.msk.f32.vlgmr.msra.gmra.mxu1 %vm233_vm3, %v3809_v28 }
 0x1d5   :  { %3209 = vmatpush3.msk.msra.mxu1 %vm618_vm4, %v3824_v33  ;;  %3202 = vmatprep.mubr.msk.f32.mxu1 %vm3593_vm1, %v3592_v2 }
 0x1d6   :  { %3210 = vmatprep.subr.mxu1 %v3592_v2 }
 0x1d7   :  { %3211 = vmatpush3.msra.mxu1 %v3817_v31 }
 0x1d8   :  { %3212 = vmatprep.subr.mxu1 %v3592_v2  ;;  %3203 = vmatmul.mubr.msk.f32.gmra.mxu1 %vm233_vm3, %v3817_v31 }
 0x1d9   :  { %3213 = vmatpush3.msra.mxu1 %v3809_v28  ;;  %3205 = vmatprep.mubr.msk.f32.mxu1 %vm3593_vm1, %v3592_v2 }
 0x1da   :  { %3238 = vmatprep.subr.mxu1 %v3592_v2 }
 0x1dc   :  { %3206 = vmatmul.mubr.msk.f32.gmra.mxu1 %vm233_vm3, %v3824_v33 }
 0x1dd   :  { %3214 = vmatprep.mubr.msk.f32.mxu1 %vm3593_vm1, %v3592_v2 }
 0x288   :  { %v400_v36 = vpop.f32.mrf.mxu1 }
 0x28a   :  { %v3188_v37 = vpop.f32.mrf.mxu1 }
 0x28c   :  { %v405_v38 = vpop.f32.mrf.mxu1 }
 0x28e   :  { %v3191_v39 = vpop.f32.mrf.mxu1 }
 0x290   :  { %v410_v40 = vpop.f32.mrf.mxu1 }
 0x292   :  { %v3194_v41 = vpop.f32.mrf.mxu1 }
 0x293   :  { %v715_v41 = vsub.s32 1, %v3860_v49 }
 0x294   :  { %v3851_v42 = vpop.f32.mrf.mxu1 }
 0x295   :  { %533 = vperm.xlu0 %3427, %v3851_v42  }
 0x296   :  { %v3201_v43 = vpop.f32.mrf.mxu1 }
 0x298   :  { %v3854_v44 = vpop.f32.mrf.mxu1 }
 0x299   :  { %538 = vperm.xlu0 %3427, %v3854_v44  }
 0x29a   :  { %v3204_v45 = vpop.f32.mrf.mxu1 }
 0x29c   :  { %v3857_v46 = vpop.f32.mrf.mxu1 }
 0x29d   :  { %543 = vperm.xlu1 %3428, %v3857_v46   ;;  %3429 = vset.pattern.permute.xlu0 %v3595_v11 }
 0x29e   :  { %v3207_v47 = vpop.f32.mrf.mxu1 }
 0x2c6   :  { %496 = vxpose.xlu1.b32.start [1/3] (short) (narrow) %v400_v36, 8 }
 0x2ca   :  { %497 = vxpose.xlu1.b32.cont [2/3] (short) (narrow) %v405_v38, 8 }
 0x2ce   :  { %498 = vxpose.xlu1.b32.end [3/3] (short) (narrow) %v410_v40, 8 }
 0x2ec   :  { %3430 = vset.pattern.permute.xlu1 %v3595_v11 }
 0x310   :  { %v534_v50 = vpop.permute.xlu0 %533 }
 0x314   :  { %v539_v56 = vpop.permute.xlu0 %538 }
 0x318   :  { %v544_v51 = vpop.permute.xlu1 %543 }
 0x342   :  { %v3865_v53 = vpop.trf.xlu1 }
 0x343   :  { %v549_v54 = vrot.slane %v3865_v53, %v3863_v52  ;;  %v716_v47 = vrot.slane %v3865_v53, %v715_v41 }
 0x345   :  { %v550_v57 = vadd.f32 %v549_v54, %v534_v50  ;;  %v551_v58 = vadd.f32 %v549_v54, %v539_v56  ;;  %v552_v59 = vadd.f32 %v549_v54, %v544_v51 }
 0x347   :  { %vm553_vm6 = vcmp.gt.f32.partialorder %v550_v57, 0.0  ;;  %v556_v61 = vmul.f32 0.2, %v550_v57  ;;  %vm554_vm7 = vcmp.gt.f32.partialorder %v551_v58, 0.0  ;;  %v557_v62 = vmul.f32 0.2, %v551_v58 }
 0x348   :  { %v558_v1 = vmul.f32 0.2, %v552_v59  ;;  %vm555_vm10 = vcmp.gt.f32.partialorder %v552_v59, 0.0 }
 0x349   :  { %v559_v63 = vsel %vm553_vm6, %v550_v57, %v556_v61  ;;  %v560_v0 = vsel %vm554_vm7, %v551_v58, %v557_v62 }
 0x34a   :  { %v565_v3 = vsel %vm562_vm5, %v559_v63, -1e+30  ;;  %v566_v6 = vsel %vm563_vm9, %v560_v0, -1e+30  ;;  %v561_v7 = vsel %vm555_vm10, %v552_v59, %v558_v1  ;;  %v2963_v63 = vld [vmem:[%s3627_s21 + $0x18] sm:$0xff] }
 0x34b   :  { %v569_v5 = vsel %vm568_vm8, %v565_v3, -inf  ;;  %v572_v8 = vsel %vm568_vm8, %v566_v6, -inf  ;;  %v567_v9 = vsel %vm564_vm11, %v561_v7, -1e+30 }
 0x34c   :  { %570 = vmax.xlane.f32.xlu0 %v569_v5  ;;  %v576_v10 = vsel %vm575_vm12, %v567_v9, -inf }
 0x350   :  { %573 = vmax.xlane.f32.xlu0 %v572_v8 }
 0x354   :  { %577 = vmax.xlane.f32.xlu0 %v576_v10 }
 0x3d5   :  { %v571_v12 = vpop.xlane.xlu0 %570 }
 0x3d6   :  { %v579_v13 = vsub.f32 %v565_v3, %v571_v12 }
 0x3d8   :  { %v582_v14 = vmul.f32 1.442695, %v579_v13 }
 0x3d9   :  { %v574_v16 = vpop.xlane.xlu0 %573 }
 0x3da   :  { %3433 = vpow2.f32 %v582_v14  ;;  %v580_v17 = vsub.f32 %v566_v6, %v574_v16  ;;  %v2972_v14 = vld [vmem:[%s3642_s3 + $0x10] sm:$0xff] }
 0x3dc   :  { %v584_v18 = vmul.f32 1.442695, %v580_v17 }
 0x3dd   :  { %v578_v19 = vpop.xlane.xlu0 %577 }
 0x3de   :  { %3435 = vpow2.f32 %v584_v18  ;;  %v581_v20 = vsub.f32 %v567_v9, %v578_v19  ;;  %v2962_v9 = vld [vmem:[%s3627_s21 + $0x10] sm:$0xff]  ;;  %s4379_s21 = sld [smem:[#allocation10_spill]] }
 0x3e0   :  { %v586_v22 = vmul.f32 1.442695, %v581_v20 }
 0x3e2   :  { %3437 = vpow2.f32 %v586_v22 }
 0x3e7   :  { %v3434_v23 = vpop.eup %3433 }
 0x3e8   :  { %v588_v24 = vmul.f32 %v3434_v23, %v3870_v55 }
 0x3ea   :  { %v591_v26 = vsel %vm568_vm8, %v588_v24, 0.0 }
 0x3eb   :  { %v3436_v27 = vpop.eup %3435  ;;  %592 = vadd.xlane.f32.xlu0 %v591_v26 }
 0x3ec   :  { %v589_v29 = vmul.f32 %v3436_v27, %v3874_v60 }
 0x3ee   :  { %v594_v30 = vsel %vm568_vm8, %v589_v29, 0.0 }
 0x3ef   :  { %v3438_v32 = vpop.eup %3437  ;;  %595 = vadd.xlane.f32.xlu0 %v594_v30 }
 0x3f0   :  { %v590_v34 = vmul.f32 %v3438_v32, %v3880_v4 }
 0x3f2   :  { %v597_v36 = vsel %vm575_vm12, %v590_v34, 0.0 }
 0x3f3   :  { %598 = vadd.xlane.f32.xlu1 %v597_v36 }
 0x404   :  { %706 = vperm.xlu1 %3430, %v3854_v44  }
 0x405   :  { %702 = vperm.xlu0 %3429, %v3851_v42  }
 0x409   :  { %710 = vperm.xlu0 %3429, %v3857_v46  }
 0x474   :  { %v593_v37 = vpop.xlane.xlu0 %592 }
 0x475   :  { %v600_v38 = vmax.f32 %v593_v37, 1e-09 }
 0x477   :  { %3439 = vrcp.f32 %v600_v38 }
 0x478   :  { %v596_v39 = vpop.xlane.xlu0 %595 }
 0x479   :  { %v601_v40 = vmax.f32 %v596_v39, 1e-09 }
 0x47b   :  { %3441 = vrcp.f32 %v601_v40 }
 0x47c   :  { %v599_v43 = vpop.xlane.xlu1 %598 }
 0x47d   :  { %v602_v45 = vmax.f32 %v599_v43, 1e-09 }
 0x47f   :  { %3443 = vrcp.f32 %v602_v45 }
 0x480   :  { %v707_v44 = vpop.permute.xlu1 %706  ;;  %v703_v42 = vpop.permute.xlu0 %702 }
 0x481   :  { %v718_v48 = vadd.f32 %v716_v47, %v707_v44  ;;  %v717_v46 = vadd.f32 %v716_v47, %v703_v42 }
 0x483   :  { %v724_v50 = vmul.f32 0.2, %v718_v48  ;;  %v723_v51 = vmul.f32 0.2, %v717_v46  ;;  %vm721_vm13 = vcmp.gt.f32.partialorder %v718_v48, 0.0  ;;  %vm720_vm14 = vcmp.gt.f32.partialorder %v717_v46, 0.0 }
 0x484   :  { %v3440_v54 = vpop.eup %3439  ;;  %v711_v56 = vpop.permute.xlu0 %710 }
 0x485   :  { %v606_v57 = vmul.f32 %v3440_v54, %v588_v24  ;;  %v719_v58 = vadd.f32 %v716_v47, %v711_v56  ;;  %v727_v59 = vsel %vm721_vm13, %v718_v48, %v724_v50  ;;  %v726_v61 = vsel %vm720_vm14, %v717_v46, %v723_v51 }
 0x486   :  { %v730_v62 = vsel %vm563_vm9, %v727_v59, -1e+30  ;;  %v729_v53 = vsel %vm562_vm5, %v726_v61, -1e+30  ;;  %v2968_v61 = vld [vmem:[%s3637_s29 + $0x18] sm:$0xff] }
 0x487   :  { %v725_v0 = vmul.f32 0.2, %v719_v58  ;;  %3215 = vmatmul.mubr.msk.f32.vlgmr.msra.gmra.mxu1 %vm568_vm8, %v606_v57  ;;  %v735_v1 = vsel %vm568_vm8, %v730_v62, -inf  ;;  %v732_v3 = vsel %vm568_vm8, %v729_v53, -inf  ;;  %vm722_vm15 = vcmp.gt.f32.partialorder %v719_v58, 0.0 }
 0x488   :  { %v3442_v5 = vpop.eup %3441  ;;  %736 = vmax.xlane.f32.xlu1 %v735_v1  ;;  %733 = vmax.xlane.f32.xlu0 %v732_v3 }
 0x489   :  { %3217 = vmatprep.mubr.msk.f32.mxu1 %vm3593_vm1, %v3592_v2  ;;  %v607_v6 = vmul.f32 %v3442_v5, %v589_v29  ;;  %v728_v7 = vsel %vm722_vm15, %v719_v58, %v725_v0  ;;  %3239 = vmatpush3.msra.mxu1 %v2963_v63 }
 0x48a   :  { %v731_v8 = vsel %vm564_vm11, %v728_v7, -1e+30  ;;  %3240 = vmatprep.subr.mxu1 %v3592_v2 }
 0x48b   :  { %3218 = vmatmul.mubr.msk.f32.gmra.mxu1 %vm568_vm8, %v607_v6  ;;  %v738_v10 = vsel %vm575_vm12, %v731_v8, -inf }
 0x48c   :  { %v3444_v12 = vpop.eup %3443  ;;  %739 = vmax.xlane.f32.xlu0 %v738_v10  ;;  %3220 = vmatprep.mubr.msk.f32.mxu1 %vm3593_vm1, %v3592_v2 }
 0x48d   :  { %v608_v13 = vmul.f32 %v3444_v12, %v590_v34  ;;  %3241 = vmatpush3.msra.mxu1 %v2962_v9 }
 0x48e   :  { %3264 = vmatprep.subr.mxu1 %v3592_v2 }
 0x48f   :  { %3221 = vmatmul.mubr.msk.f32.gmra.mxu1 %vm568_vm8, %v608_v13 }
 0x490   :  { %3242 = vmatprep.mubr.msk.f32.mxu1 %vm3593_vm1, %v3592_v2 }
 0x493   :  { %3243 = vmatmul.mubr.msk.f32.vlgmr.msra.gmra.mxu1 %vm233_vm3, %v3784_v15  ;;  %v2973_v15 = vld [vmem:[%s3642_s3 + $0x18] sm:$0xff]  ;;  %s4382_s3 = sld [smem:[#allocation12_spill]] }
 0x494   :  { %3245 = vmatprep.mubr.msk.f32.mxu1 %vm3593_vm1, %v3592_v2  ;;  %3265 = vmatpush3.msra.mxu1 %v2973_v15 }
 0x495   :  { %3266 = vmatprep.subr.mxu1 %v3592_v2 }
 0x496   :  { %3267 = vmatpush3.msra.mxu1 %v2972_v14 }
 0x497   :  { %3246 = vmatmul.mubr.msk.f32.gmra.mxu1 %vm233_vm3, %v3793_v21  ;;  %3292 = vmatprep.subr.mxu1 %v3592_v2 }
 0x498   :  { %3248 = vmatprep.mubr.msk.f32.mxu1 %vm3593_vm1, %v3592_v2 }
 0x499   :  { %773 = vrot.lane.b32.xlu1 %v3817_v31, %s3596_s0 }
 0x49b   :  { %3249 = vmatmul.mubr.msk.f32.gmra.mxu1 %vm233_vm3, %v3802_v25 }
 0x49c   :  { %3268 = vmatprep.mubr.msk.f32.mxu1 %vm3593_vm1, %v3592_v2 }
 0x511   :  { %v737_v21 = vpop.xlane.xlu1 %736  ;;  %v734_v16 = vpop.xlane.xlu0 %733 }
 0x512   :  { %v742_v17 = vsub.f32 %v730_v62, %v737_v21  ;;  %v741_v18 = vsub.f32 %v729_v53, %v734_v16  ;;  %v2967_v62 = vld [vmem:[%s3637_s29 + $0x10] sm:$0xff]  ;;  %s4381_s29 = sld [smem:[#allocation13_spill]] }
 0x514   :  { %v746_v19 = vmul.f32 1.442695, %v742_v17  ;;  %v744_v31 = vmul.f32 1.442695, %v741_v18 }
 0x515   :  { %v740_v20 = vpop.xlane.xlu0 %739  ;;  %v774_v44 = vpop.permute.xlu1 %773 }
 0x516   :  { %3445 = vpow2.f32 %v746_v19  ;;  %v743_v25 = vsub.f32 %v731_v8, %v740_v20 }
 0x517   :  { %3447 = vpow2.f32 %v744_v31 }
 0x518   :  { %v748_v22 = vmul.f32 1.442695, %v743_v25 }
 0x51a   :  { %3449 = vpow2.f32 %v748_v22 }
 0x523   :  { %v3446_v23 = vpop.eup %3445 }
 0x524   :  { %v3448_v24 = vpop.eup %3447  ;;  %v751_v30 = vmul.f32 %v3446_v23, %v3874_v60 }
 0x525   :  { %v750_v26 = vmul.f32 %v3448_v24, %v3870_v55 }
 0x526   :  { %v756_v36 = vsel %vm568_vm8, %v751_v30, 0.0 }
 0x527   :  { %v3450_v27 = vpop.eup %3449  ;;  %v753_v29 = vsel %vm568_vm8, %v750_v26, 0.0 }
 0x528   :  { %754 = vadd.xlane.f32.xlu0 %v753_v29  ;;  %v752_v32 = vmul.f32 %v3450_v27, %v3880_v4  ;;  %v4027_v27 = vld [vmem:[%s3622_s17 + $0x28] sm:$0x3]  ;;  %v4030_v29 = vld [vmem:[%s3622_s17 + $0x18] sm:$0xff] }
 0x529   :  { %vm1241_vm0 = vcmp.gt.f32.partialorder %v4027_v27, 0.0  ;;  %vm1239_vm2 = vcmp.gt.f32.partialorder %v4030_v29, 0.0 }
 0x52a   :  { %v759_v34 = vsel %vm575_vm12, %v752_v32, 0.0 }
 0x52b   :  { %760 = vadd.xlane.f32.xlu1 %v759_v34 }
 0x52c   :  { %757 = vadd.xlane.f32.xlu0 %v756_v36 }
 0x53c   :  { %771 = vrot.lane.b32.xlu1 %v3809_v28, %s3596_s0 }
 0x542   :  { %775 = vrot.lane.b32.xlu0 %v3824_v33, %s3596_s0 }
 0x547   :  { %v3955_v55 = vpop.f32.mrf.mxu1 }
 0x549   :  { %v3216_v37 = vpop.f32.mrf.mxu1 }
 0x54b   :  { %v3957_v38 = vpop.f32.mrf.mxu1 }
 0x54d   :  { %v3219_v60 = vpop.f32.mrf.mxu1 }
 0x54e   :  { %v4033_v60 = vld [vmem:[%s3622_s17 + $0x20] sm:$0xff]  ;;  %s4378_s17 = sld [smem:[#allocation8_spill]] }
 0x54f   :  { %v3959_v39 = vpop.f32.mrf.mxu1  ;;  %vm1240_vm9 = vcmp.gt.f32.partialorder %v4033_v60, 0.0 }
 0x551   :  { %v3222_v4 = vpop.f32.mrf.mxu1 }
 0x553   :  { %v3961_v40 = vpop.f32.mrf.mxu1 }
 0x554   :  { %3269 = vmatmul.mubr.msk.f32.vlgmr.msra.gmra.mxu1 %vm233_vm3, %v3961_v40 }
 0x555   :  { %v3244_v43 = vpop.f32.mrf.mxu1  ;;  %3271 = vmatprep.mubr.msk.f32.mxu1 %vm3593_vm1, %v3592_v2 }
 0x557   :  { %v3967_v28 = vpop.f32.mrf.mxu1 }
 0x558   :  { %3272 = vmatmul.mubr.msk.f32.gmra.mxu1 %vm233_vm3, %v3967_v28 }
 0x559   :  { %v3247_v33 = vpop.f32.mrf.mxu1  ;;  %3274 = vmatprep.mubr.msk.f32.mxu1 %vm3593_vm1, %v3592_v2 }
 0x55b   :  { %v3973_v45 = vpop.f32.mrf.mxu1 }
 0x55c   :  { %3275 = vmatmul.mubr.msk.f32.gmra.mxu1 %vm233_vm3, %v3973_v45 }
 0x55d   :  { %v3250_v47 = vpop.f32.mrf.mxu1  ;;  %3298 = vmatprep.mubr.msk.f32.mxu1 %vm3593_vm1, %v3592_v2 }
 0x5b1   :  { %v755_v42 = vpop.xlane.xlu0 %754 }
 0x5b2   :  { %v762_v48 = vmax.f32 %v755_v42, 1e-09 }
 0x5b4   :  { %3451 = vrcp.f32 %v762_v48  ;;  %v761_v46 = vpop.xlane.xlu1 %760 }
 0x5b5   :  { %v758_v50 = vpop.xlane.xlu0 %757  ;;  %v764_v51 = vmax.f32 %v761_v46, 1e-09 }
 0x5b6   :  { %v763_v54 = vmax.f32 %v758_v50, 1e-09 }
 0x5b8   :  { %3453 = vrcp.f32 %v763_v54  ;;  %v772_v57 = vpop.permute.xlu1 %771 }
 0x5b9   :  { %v776_v56 = vpop.permute.xlu0 %775  ;;  %3455 = vrcp.f32 %v764_v51 }
 0x5ba   :  { %3224 = vmatpush3.msk.msra.mxu0 %vm618_vm4, %v776_v56 }
 0x5bb   :  { %3225 = vmatprep.subr.mxu0 %v3592_v2 }
 0x5bc   :  { %3226 = vmatpush3.msra.mxu0 %v774_v44 }
 0x5bd   :  { %3227 = vmatprep.subr.mxu0 %v3592_v2 }
 0x5be   :  { %3228 = vmatpush3.msra.mxu0 %v772_v57 }
 0x5bf   :  { %3251 = vmatprep.subr.mxu0 %v3592_v2 }
 0x5c1   :  { %v3452_v58 = vpop.eup %3451 }
 0x5c2   :  { %v768_v59 = vmul.f32 %v3452_v58, %v750_v26 }
 0x5c4   :  { %3230 = vmatmul.mubr.msk.f32.vlgmr.msra.gmra.mxu0 %vm568_vm8, %v768_v59 }
 0x5c5   :  { %v3454_v53 = vpop.eup %3453  ;;  %3252 = vmatpush3.msra.mxu0 %v2968_v61  ;;  %3232 = vmatprep.mubr.msk.f32.mxu0 %vm3593_vm1, %v3592_v2 }
 0x5c6   :  { %v769_v63 = vmul.f32 %v3454_v53, %v751_v30  ;;  %3253 = vmatprep.subr.mxu0 %v3592_v2  ;;  %v3456_v0 = vpop.eup %3455 }
 0x5c7   :  { %3254 = vmatpush3.msra.mxu0 %v2967_v62  ;;  %v770_v1 = vmul.f32 %v3456_v0, %v752_v32 }
 0x5c8   :  { %3233 = vmatmul.mubr.msk.f32.gmra.mxu0 %vm568_vm8, %v769_v63  ;;  %3277 = vmatprep.subr.mxu0 %v3592_v2 }
 0x5c9   :  { %3235 = vmatprep.mubr.msk.f32.mxu0 %vm3593_vm1, %v3592_v2 }
 0x5cc   :  { %3236 = vmatmul.mubr.msk.f32.gmra.mxu0 %vm568_vm8, %v770_v1 }
 0x5cd   :  { %3255 = vmatprep.mubr.msk.f32.mxu0 %vm3593_vm1, %v3592_v2 }
 0x5d0   :  { %3256 = vmatmul.mubr.msk.f32.vlgmr.msra.gmra.mxu0 %vm233_vm3, %v3961_v40 }
 0x5d1   :  { %3278 = vmatpush3.msk.msra.mxu0 %vm618_vm4, %v3973_v45  ;;  %3258 = vmatprep.mubr.msk.f32.mxu0 %vm3593_vm1, %v3592_v2 }
 0x5d2   :  { %3279 = vmatprep.subr.mxu0 %v3592_v2 }
 0x5d3   :  { %3280 = vmatpush3.msra.mxu0 %v3967_v28 }
 0x5d4   :  { %3281 = vmatprep.subr.mxu0 %v3592_v2  ;;  %3259 = vmatmul.mubr.msk.f32.gmra.mxu0 %vm233_vm3, %v3967_v28 }
 0x5d5   :  { %3282 = vmatpush3.msra.mxu0 %v3961_v40  ;;  %3261 = vmatprep.mubr.msk.f32.mxu0 %vm3593_vm1, %v3592_v2 }
 0x5d6   :  { %3307 = vmatprep.subr.mxu0 %v3592_v2 }
 0x5d8   :  { %3262 = vmatmul.mubr.msk.f32.gmra.mxu0 %vm233_vm3, %v3973_v45 }
 0x5d9   :  { %3283 = vmatprep.mubr.msk.f32.mxu0 %vm3593_vm1, %v3592_v2 }
 0x614   :  { %v1158_v3 = vpop.f32.mrf.mxu1 }
 0x615   :  { %1376 = vperm.xlu0 %3429, %v1158_v3  }
 0x616   :  { %v3270_v5 = vpop.f32.mrf.mxu1 }
 0x618   :  { %v1163_v6 = vpop.f32.mrf.mxu1 }
 0x619   :  { %1380 = vperm.xlu1 %3430, %v1163_v6  }
 0x61a   :  { %v3273_v7 = vpop.f32.mrf.mxu1 }
 0x61c   :  { %v1168_v8 = vpop.f32.mrf.mxu1 }
 0x61d   :  { %1384 = vperm.xlu0 %3429, %v1168_v8  }
 0x61e   :  { %v3276_v9 = vpop.f32.mrf.mxu1 }
 0x621   :  { %3431 = vset.pattern.permute.xlu0 %v3594_v35 }
 0x622   :  { %1210 = vperm.xlu0 %3431, %v1158_v3  }
 0x626   :  { %1215 = vperm.xlu0 %3431, %v1163_v6  }
 0x62a   :  { %1220 = vperm.xlu0 %3431, %v1168_v8  }
 0x62e   :  { %3432 = vset.pattern.permute.xlu0 %v3595_v11 }
 0x684   :  { %v4017_v10 = vpop.f32.mrf.mxu0 }
 0x686   :  { %v3231_v12 = vpop.f32.mrf.mxu0 }
 0x688   :  { %v4019_v13 = vpop.f32.mrf.mxu0 }
 0x68a   :  { %v3234_v15 = vpop.f32.mrf.mxu0 }
 0x68c   :  { %v4021_v14 = vpop.f32.mrf.mxu0 }
 0x68e   :  { %v3237_v21 = vpop.f32.mrf.mxu0 }
 0x690   :  { %v1075_v16 = vpop.f32.mrf.mxu0  ;;  %v1377_v31 = vpop.permute.xlu0 %1376 }
 0x691   :  { %1172 = vxpose.xlu1.b32.start [1/3] (short) (narrow) %v1075_v16, 8 }
 0x692   :  { %v3257_v17 = vpop.f32.mrf.mxu0 }
 0x694   :  { %v1080_v35 = vpop.f32.mrf.mxu0  ;;  %v1381_v25 = vpop.permute.xlu1 %1380 }
 0x695   :  { %1173 = vxpose.xlu1.b32.cont [2/3] (short) (narrow) %v1080_v35, 8 }
 0x696   :  { %v3260_v18 = vpop.f32.mrf.mxu0 }
 0x698   :  { %v1085_v19 = vpop.f32.mrf.mxu0  ;;  %v1385_v20 = vpop.permute.xlu0 %1384 }
 0x699   :  { %1174 = vxpose.xlu1.b32.end [3/3] (short) (narrow) %v1085_v19, 8 }
 0x69a   :  { %v3263_v11 = vpop.f32.mrf.mxu0 }
 0x69d   :  { %v1211_v22 = vpop.permute.xlu0 %1210 }
 0x6a1   :  { %v1216_v34 = vpop.permute.xlu0 %1215 }
 0x6a5   :  { %v1221_v54 = vpop.permute.xlu0 %1220 }
 0x70d   :  { %v1188_v23 = vpop.trf.xlu1 }
 0x70e   :  { %v1226_v24 = vrot.slane %v1188_v23, %v3863_v52  ;;  %v1390_v26 = vrot.slane %v1188_v23, %v715_v41 }
 0x710   :  { %v1227_v30 = vadd.f32 %v1226_v24, %v1211_v22  ;;  %v1391_v32 = vadd.f32 %v1390_v26, %v1377_v31  ;;  %v1392_v36 = vadd.f32 %v1390_v26, %v1381_v25  ;;  %v1393_v37 = vadd.f32 %v1390_v26, %v1385_v20 }
 0x711   :  { %v1228_v33 = vadd.f32 %v1226_v24, %v1216_v34  ;;  %v1229_v58 = vadd.f32 %v1226_v24, %v1221_v54 }
 0x712   :  { %vm1394_vm5 = vcmp.gt.f32.partialorder %v1391_v32, 0.0  ;;  %v1397_v4 = vmul.f32 0.2, %v1391_v32  ;;  %vm1396_vm6 = vcmp.gt.f32.partialorder %v1393_v37, 0.0  ;;  %v1399_v43 = vmul.f32 0.2, %v1393_v37 }
 0x713   :  { %vm1395_vm7 = vcmp.gt.f32.partialorder %v1392_v36, 0.0  ;;  %v1398_v41 = vmul.f32 0.2, %v1392_v36  ;;  %v1233_v44 = vmul.f32 0.2, %v1227_v30  ;;  %vm1230_vm10 = vcmp.gt.f32.partialorder %v1227_v30, 0.0 }
 0x714   :  { %v1400_v47 = vsel %vm1394_vm5, %v1391_v32, %v1397_v4  ;;  %v1402_v42 = vsel %vm1396_vm6, %v1393_v37, %v1399_v43  ;;  %v1234_v61 = vmul.f32 0.2, %v1228_v33  ;;  %vm1231_vm11 = vcmp.gt.f32.partialorder %v1228_v33, 0.0 }
 0x715   :  { %v1403_v48 = vsel %vm1239_vm2, %v1400_v47, -1e+30  ;;  %v1401_v46 = vsel %vm1395_vm7, %v1392_v36, %v1398_v41  ;;  %v1405_v50 = vsel %vm1241_vm0, %v1402_v42, -1e+30  ;;  %v1236_v59 = vsel %vm1230_vm10, %v1227_v30, %v1233_v44 }
 0x716   :  { %v1406_v51 = vsel %vm568_vm8, %v1403_v48, -inf  ;;  %v1412_v56 = vsel %vm575_vm12, %v1405_v50, -inf  ;;  %v1404_v57 = vsel %vm1240_vm9, %v1401_v46, -1e+30  ;;  %v1242_v53 = vsel %vm1239_vm2, %v1236_v59, -1e+30 }
 0x717   :  { %1407 = vmax.xlane.f32.xlu0 %v1406_v51  ;;  %1413 = vmax.xlane.f32.xlu1 %v1412_v56  ;;  %v1409_v62 = vsel %vm568_vm8, %v1404_v57, -inf  ;;  %v1237_v63 = vsel %vm1231_vm11, %v1228_v33, %v1234_v61  ;;  %v1235_v0 = vmul.f32 0.2, %v1229_v58  ;;  %vm1232_vm13 = vcmp.gt.f32.partialorder %v1229_v58, 0.0 }
 0x718   :  { %v1245_v1 = vsel %vm568_vm8, %v1242_v53, -inf  ;;  %v1243_v3 = vsel %vm1240_vm9, %v1237_v63, -1e+30  ;;  %vm1972_vm6 = vcmask 123904   ;;  %vm2818_vm7 = vcmask 1043456  }
 0x719   :  { %v1238_v5 = vsel %vm1232_vm13, %v1229_v58, %v1235_v0  ;;  %v1248_v6 = vsel %vm568_vm8, %v1243_v3, -inf  ;;  %vm2892_vm9 = vcmask 0  }
 0x71a   :  { %v1244_v7 = vsel %vm1241_vm0, %v1238_v5, -1e+30 }
 0x71b   :  { %1410 = vmax.xlane.f32.xlu0 %v1409_v62  ;;  %v1251_v8 = vsel %vm575_vm12, %v1244_v7, -inf }
 0x71f   :  { %1246 = vmax.xlane.f32.xlu0 %v1245_v1  ;;  %v1588_v1 = vld [vmem:[%s3647_s8] sm:$0xff] }
 0x723   :  { %1249 = vmax.xlane.f32.xlu0 %v1248_v6 }
 0x727   :  { %1252 = vmax.xlane.f32.xlu0 %v1251_v8 }
 0x728   :  { %1447 = vrot.lane.b32.xlu1 %v3967_v28, %s3596_s0 }
 0x73d   :  { %1449 = vrot.lane.b32.xlu0 %v3973_v45, %s3596_s0 }
 0x7a0   :  { %v1408_v9 = vpop.xlane.xlu0 %1407  ;;  %v1414_v12 = vpop.xlane.xlu1 %1413 }
 0x7a1   :  { %v1415_v15 = vsub.f32 %v1403_v48, %v1408_v9  ;;  %v1417_v21 = vsub.f32 %v1405_v50, %v1414_v12 }
 0x7a3   :  { %v1418_v16 = vmul.f32 1.442695, %v1415_v15  ;;  %v1422_v17 = vmul.f32 1.442695, %v1417_v21  ;;  %v4100_v21 = vld [vmem:[%s3632_s25] ss:$0 sm:$0xff] }
 0x7a4   :  { %v1411_v35 = vpop.xlane.xlu0 %1410  ;;  %v1448_v32 = vpop.permute.xlu1 %1447 }
 0x7a5   :  { %3457 = vpow2.f32 %v1418_v16  ;;  %v1416_v18 = vsub.f32 %v1404_v57, %v1411_v35 }
 0x7a6   :  { %3459 = vpow2.f32 %v1422_v17 }
 0x7a7   :  { %v1420_v19 = vmul.f32 1.442695, %v1416_v18 }
 0x7a8   :  { %v1247_v11 = vpop.xlane.xlu0 %1246 }
 0x7a9   :  { %3461 = vpow2.f32 %v1420_v19  ;;  %v1254_v47 = vsub.f32 %v1242_v53, %v1247_v11 }
 0x7ab   :  { %v1257_v44 = vmul.f32 1.442695, %v1254_v47 }
 0x7ac   :  { %v1250_v31 = vpop.xlane.xlu0 %1249 }
 0x7ad   :  { %v1255_v20 = vsub.f32 %v1243_v3, %v1250_v31 }
 0x7af   :  { %v1259_v25 = vmul.f32 1.442695, %v1255_v20 }
 0x7b0   :  { %v1253_v28 = vpop.xlane.xlu0 %1252 }
 0x7b1   :  { %3463 = vpow2.f32 %v1259_v25  ;;  %v1256_v42 = vsub.f32 %v1244_v7, %v1253_v28 }
 0x7b2   :  { %v3458_v22 = vpop.eup %3457  ;;  %3465 = vpow2.f32 %v1257_v44  ;;  %v4132_v44 = vld [vmem:[%s3652_s14] ss:$0 sm:$0xff]  ;;  %s4384_s14 = sld [smem:[#allocation15_spill]] }
 0x7b3   :  { %v1424_v45 = vmul.f32 %v3458_v22, %v4030_v29  ;;  %v3460_v24 = vpop.eup %3459  ;;  %v1261_v48 = vmul.f32 1.442695, %v1256_v42 }
 0x7b4   :  { %v1450_v23 = vpop.permute.xlu0 %1449  ;;  %v1426_v37 = vmul.f32 %v3460_v24, %v4027_v27 }
 0x7b5   :  { %3293 = vmatpush3.msk.msra.mxu1 %vm618_vm4, %v1450_v23  ;;  %v1427_v26 = vsel %vm568_vm8, %v1424_v45, 0.0  ;;  %3467 = vpow2.f32 %v1261_v48 }
 0x7b6   :  { %v3462_v30 = vpop.eup %3461  ;;  %1428 = vadd.xlane.f32.xlu0 %v1427_v26  ;;  %3294 = vmatprep.subr.mxu1 %v3592_v2  ;;  %v1433_v4 = vsel %vm575_vm12, %v1426_v37, 0.0 }
 0x7b7   :  { %3295 = vmatpush3.msra.mxu1 %v1448_v32  ;;  %v1425_v34 = vmul.f32 %v3462_v30, %v4033_v60 }
 0x7b8   :  { %3296 = vmatprep.subr.mxu1 %v3592_v2 }
 0x7b9   :  { %v1430_v36 = vsel %vm568_vm8, %v1425_v34, 0.0 }
 0x7ba   :  { %1431 = vadd.xlane.f32.xlu0 %v1430_v36 }
 0x7be   :  { %v3464_v43 = vpop.eup %3463  ;;  %1434 = vadd.xlane.f32.xlu0 %v1433_v4 }
 0x7bf   :  { %v4070_v41 = vmul.f32 %v3464_v43, %v4033_v60  ;;  %v3466_v46 = vpop.eup %3465 }
 0x7c0   :  { %v1263_v50 = vmul.f32 %v3466_v46, %v4030_v29  ;;  %v4136_v46 = vld [vmem:[%s3657_s19] ss:$0 sm:$0xff]  ;;  %s4385_s19 = sld [smem:[#allocation14_spill]] }
 0x7c1   :  { %v1269_v33 = vsel %vm568_vm8, %v4070_v41, 0.0 }
 0x7c2   :  { %1270 = vadd.xlane.f32.xlu1 %v1269_v33  ;;  %v3468_v51 = vpop.eup %3467  ;;  %v1266_v60 = vsel %vm568_vm8, %v1263_v50, 0.0 }
 0x7c3   :  { %v4079_v54 = vmul.f32 %v3468_v51, %v4027_v27  ;;  %v2989_v51 = vld [vmem:[%s3632_s25 + $0x1] ss:$0 sm:$0xff]  ;;  %s4380_s25 = sld [smem:[#allocation9_spill]] }
 0x7c5   :  { %v1272_v56 = vsel %vm575_vm12, %v4079_v54, 0.0  ;;  %vm882_vm12 = vcmask 64512  }
 0x7d4   :  { %1445 = vrot.lane.b32.xlu0 %v3961_v40, %s3596_s0 }
 0x7f3   :  { %1267 = vadd.xlane.f32.xlu0 %v1266_v60 }
 0x7f7   :  { %1273 = vadd.xlane.f32.xlu0 %v1272_v56 }
 0x80d   :  { %873 = vrot.lane.b32.xlu0 %v4017_v10, %s3597_s5  ;;  %v1589_v10 = vld [vmem:[%s3647_s8 + $0x8] sm:$0xff]  ;;  %s4383_s8 = sld [smem:[#allocation11_spill]] }
 0x83f   :  { %v1429_v40 = vpop.xlane.xlu0 %1428 }
 0x840   :  { %v1436_v57 = vmax.f32 %v1429_v40, 1e-09 }
 0x842   :  { %3469 = vrcp.f32 %v1436_v57 }
 0x843   :  { %v1432_v29 = vpop.xlane.xlu0 %1431 }
 0x844   :  { %v1437_v58 = vmax.f32 %v1432_v29, 1e-09 }
 0x846   :  { %3471 = vrcp.f32 %v1437_v58 }
 0x847   :  { %v1435_v59 = vpop.xlane.xlu0 %1434 }
 0x848   :  { %v1438_v27 = vmax.f32 %v1435_v59, 1e-09 }
 0x84a   :  { %3473 = vrcp.f32 %v1438_v27 }
 0x84b   :  { %v1446_v61 = vpop.permute.xlu0 %1445  ;;  %v1271_v6 = vpop.xlane.xlu1 %1270 }
 0x84c   :  { %3297 = vmatpush3.msra.mxu1 %v1446_v61  ;;  %v1276_v8 = vmax.f32 %v1271_v6, 1e-09 }
 0x84d   :  { %3320 = vmatprep.subr.mxu1 %v3592_v2 }
 0x84f   :  { %v3470_v62 = vpop.eup %3469 }
 0x850   :  { %v1442_v53 = vmul.f32 %v3470_v62, %v1424_v45 }
 0x852   :  { %3299 = vmatmul.mubr.msk.f32.vlgmr.msra.gmra.mxu1 %vm568_vm8, %v1442_v53 }
 0x853   :  { %v3472_v63 = vpop.eup %3471  ;;  %3301 = vmatprep.mubr.msk.f32.mxu1 %vm3593_vm1, %v3592_v2  ;;  %3321 = vmatpush3.msra.mxu1 %v1589_v10 }
 0x854   :  { %v1443_v0 = vmul.f32 %v3472_v63, %v1425_v34  ;;  %3322 = vmatprep.subr.mxu1 %v3592_v2 }
 0x855   :  { %3323 = vmatpush3.msra.mxu1 %v1588_v1 }
 0x856   :  { %3302 = vmatmul.mubr.msk.f32.gmra.mxu1 %vm568_vm8, %v1443_v0  ;;  %3346 = vmatprep.subr.mxu1 %v3592_v2 }
 0x857   :  { %v3474_v3 = vpop.eup %3473  ;;  %3304 = vmatprep.mubr.msk.f32.mxu1 %vm3593_vm1, %v3592_v2 }
 0x858   :  { %v1444_v5 = vmul.f32 %v3474_v3, %v1426_v37 }
 0x85a   :  { %3305 = vmatmul.mubr.msk.f32.gmra.mxu1 %vm568_vm8, %v1444_v5 }
 0x85b   :  { %3324 = vmatprep.mubr.msk.f32.mxu1 %vm3593_vm1, %v3592_v2 }
 0x87c   :  { %v1268_v7 = vpop.xlane.xlu0 %1267 }
 0x87d   :  { %v1275_v9 = vmax.f32 %v1268_v7, 1e-09 }
 0x87f   :  { %3475 = vrcp.f32 %v1275_v9 }
 0x880   :  { %v1274_v12 = vpop.xlane.xlu0 %1273  ;;  %3477 = vrcp.f32 %v1276_v8 }
 0x881   :  { %v1277_v15 = vmax.f32 %v1274_v12, 1e-09 }
 0x883   :  { %3479 = vrcp.f32 %v1277_v15 }
 0x884   :  { %v874_v16 = vpop.permute.xlu0 %873 }
 0x885   :  { %v883_v17 = vsel %vm882_vm12, %v3955_v55, %v874_v16 }
 0x886   :  { %v893_v35 = vadd.f32 %v4100_v21, %v883_v17 }
 0x888   :  { %v899_v18 = vmin.f32 %v893_v35, 0.0  ;;  %vm896_vm14 = vcmp.gt.f32.partialorder %v893_v35, 0.0 }
 0x88a   :  { %v902_v19 = vmul.f32 1.442695, %v899_v18 }
 0x88c   :  { %v3476_v11 = vpop.eup %3475  ;;  %3481 = vpow2.f32 %v902_v19 }
 0x88d   :  { %v1281_v31 = vmul.f32 %v3476_v11, %v1263_v50  ;;  %v3478_v20 = vpop.eup %3477 }
 0x88e   :  { %v1282_v25 = vmul.f32 %v3478_v20, %v4070_v41 }
 0x88f   :  { %3284 = vmatmul.mubr.msk.f32.vlgmr.msra.gmra.mxu0 %vm568_vm8, %v1281_v31 }
 0x890   :  { %3286 = vmatprep.mubr.msk.f32.mxu0 %vm3593_vm1, %v3592_v2  ;;  %3308 = vmatpush3.msra.mxu0 %v1589_v10  ;;  %v3480_v28 = vpop.eup %3479 }
 0x891   :  { %3309 = vmatprep.subr.mxu0 %v3592_v2  ;;  %v1283_v55 = vmul.f32 %v3480_v28, %v4079_v54 }
 0x892   :  { %3310 = vmatpush3.msra.mxu0 %v1588_v1 }
 0x893   :  { %3287 = vmatmul.mubr.msk.f32.gmra.mxu0 %vm568_vm8, %v1282_v25  ;;  %3333 = vmatprep.subr.mxu0 %v3592_v2 }
 0x894   :  { %3289 = vmatprep.mubr.msk.f32.mxu0 %vm3593_vm1, %v3592_v2 }
 0x897   :  { %3290 = vmatmul.mubr.msk.f32.gmra.mxu0 %vm568_vm8, %v1283_v55 }
 0x898   :  { %3311 = vmatprep.mubr.msk.f32.mxu0 %vm3593_vm1, %v3592_v2 }
 0x899   :  { %v3482_v22 = vpop.eup %3481 }
 0x89a   :  { %v2959_v45 = vadd.f32 -1.0, %v3482_v22 }
 0x89c   :  { %v4118_v23 = vsel %vm896_vm14, %v893_v35, %v2959_v45 }
 0x89d   :  { %3312 = vmatmul.mubr.msk.f32.vlgmr.msra.gmra.mxu0 %vm233_vm3, %v4118_v23 }
 0x89e   :  { %3314 = vmatprep.mubr.msk.f32.mxu0 %vm3593_vm1, %v3592_v2 }
 0x912   :  { %v1530_v24 = vpop.f32.mrf.mxu1 }
 0x913   :  { %1547 = vrot.lane.b32.xlu1 %v1530_v24, %s3597_s5 }
 0x914   :  { %v3300_v26 = vpop.f32.mrf.mxu1 }
 0x916   :  { %v1535_v30 = vpop.f32.mrf.mxu1 }
 0x917   :  { %875 = vrot.lane.b32.xlu1 %v4019_v13, %s3597_s5  ;;  %1549 = vrot.lane.b32.xlu0 %v1535_v30, %s3597_s5 }
 0x918   :  { %v3303_v32 = vpop.f32.mrf.mxu1 }
 0x91a   :  { %v1540_v34 = vpop.f32.mrf.mxu1 }
 0x91b   :  { %877 = vrot.lane.b32.xlu1 %v4021_v14, %s3597_s5  ;;  %1551 = vrot.lane.b32.xlu0 %v1540_v34, %s3597_s5 }
 0x91c   :  { %v3306_v36 = vpop.f32.mrf.mxu1 }
 0x94f   :  { %v1361_v37 = vpop.f32.mrf.mxu0 }
 0x951   :  { %v3285_v4 = vpop.f32.mrf.mxu0 }
 0x953   :  { %v1366_v43 = vpop.f32.mrf.mxu0 }
 0x955   :  { %v3288_v41 = vpop.f32.mrf.mxu0 }
 0x957   :  { %v1371_v33 = vpop.f32.mrf.mxu0 }
 0x959   :  { %v3291_v47 = vpop.f32.mrf.mxu0 }
 0x95d   :  { %v1672_v13 = vpop.f32.mrf.mxu0 }
 0x95e   :  { %v1673_v42 = vadd.f32 %v4132_v44, %v1672_v13 }
 0x95f   :  { %v3313_v48 = vpop.f32.mrf.mxu0 }
 0x960   :  { %3483 = vtanh.f32 %v1673_v42 }
 0x96d   :  { %v3484_v14 = vpop.eup %3483 }
 0x96e   :  { %v1696_v50 = vmul.f32 %v3484_v14, %v4136_v46 }
 0x970   :  { %1699 = vadd.xlane.f32.xlu1 %v1696_v50 }
 0x985   :  { %v1548_v60 = vpop.permute.xlu1 %1547 }
 0x986   :  { %v1556_v54 = vsel %vm882_vm12, %v1361_v37, %v1548_v60 }
 0x987   :  { %v1567_v56 = vadd.f32 %v2989_v51, %v1556_v54 }
 0x989   :  { %v1573_v40 = vmin.f32 %v1567_v56, 0.0  ;;  %v876_v57 = vpop.permute.xlu1 %875  ;;  %v1550_v29 = vpop.permute.xlu0 %1549  ;;  %vm1570_vm8 = vcmp.gt.f32.partialorder %v1567_v56, 0.0 }
 0x98a   :  { %v884_v58 = vsel %vm882_vm12, %v3957_v38, %v876_v57  ;;  %v1557_v59 = vsel %vm882_vm12, %v1366_v43, %v1550_v29 }
 0x98b   :  { %v1576_v27 = vmul.f32 1.442695, %v1573_v40  ;;  %v894_v61 = vadd.f32 %v4100_v21, %v884_v58  ;;  %v1568_v62 = vadd.f32 %v2989_v51, %v1557_v59 }
 0x98d   :  { %3485 = vpow2.f32 %v1576_v27  ;;  %v900_v53 = vmin.f32 %v894_v61, 0.0  ;;  %v1574_v10 = vmin.f32 %v1568_v62, 0.0  ;;  %v878_v63 = vpop.permute.xlu1 %877  ;;  %v1552_v0 = vpop.permute.xlu0 %1551  ;;  %vm897_vm15 = vcmp.gt.f32.partialorder %v894_v61, 0.0  ;;  %v1850_v27 = vld [vmem:[%s3662_s24 + $0x8] sm:$0xff] }
 0x98e   :  { %v885_v1 = vsel %vm882_vm12, %v3959_v39, %v878_v63  ;;  %v1558_v3 = vsel %vm882_vm12, %v1371_v33, %v1552_v0  ;;  %vm1571_vm0 = vcmp.gt.f32.partialorder %v1568_v62, 0.0  ;;  %3334 = vmatpush3.msra.mxu0 %v1850_v27 }
 0x98f   :  { %v904_v5 = vmul.f32 1.442695, %v900_v53  ;;  %v1578_v6 = vmul.f32 1.442695, %v1574_v10  ;;  %v895_v38 = vadd.f32 %v4100_v21, %v885_v1  ;;  %v1569_v7 = vadd.f32 %v2989_v51, %v1558_v3  ;;  %3335 = vmatprep.subr.mxu0 %v3592_v2 }
 0x991   :  { %3487 = vpow2.f32 %v904_v5  ;;  %v901_v8 = vmin.f32 %v895_v38, 0.0  ;;  %v1575_v9 = vmin.f32 %v1569_v7, 0.0  ;;  %vm898_vm2 = vcmp.gt.f32.partialorder %v895_v38, 0.0 }
 0x992   :  { %3489 = vpow2.f32 %v1578_v6  ;;  %vm1572_vm5 = vcmp.gt.f32.partialorder %v1569_v7, 0.0 }
 0x993   :  { %v906_v12 = vmul.f32 1.442695, %v901_v8  ;;  %v1580_v15 = vmul.f32 1.442695, %v1575_v9 }
 0x995   :  { %3491 = vpow2.f32 %v906_v12 }
 0x996   :  { %3493 = vpow2.f32 %v1580_v15 }
 0x99a   :  { %v3486_v16 = vpop.eup %3485 }
 0x99b   :  { %v2990_v17 = vadd.f32 -1.0, %v3486_v16 }
 0x99d   :  { %v4149_v35 = vsel %vm1570_vm8, %v1567_v56, %v2990_v17 }
 0x99e   :  { %v3488_v39 = vpop.eup %3487  ;;  %3325 = vmatmul.mubr.msk.f32.vlgmr.msra.gmra.mxu1 %vm233_vm3, %v4149_v35 }
 0x99f   :  { %v3490_v18 = vpop.eup %3489  ;;  %3327 = vmatprep.mubr.msk.f32.mxu1 %vm3593_vm1, %v3592_v2  ;;  %v2960_v21 = vadd.f32 -1.0, %v3488_v39 }
 0x9a0   :  { %v2991_v19 = vadd.f32 -1.0, %v3490_v18 }
 0x9a1   :  { %v4155_v11 = vsel %vm897_vm15, %v894_v61, %v2960_v21  ;;  %v1849_v61 = vld [vmem:[%s3662_s24] sm:$0xff]  ;;  %s4386_s24 = sld [smem:[#allocation17_spill]] }
 0x9a2   :  { %v3492_v31 = vpop.eup %3491  ;;  %3315 = vmatmul.mubr.msk.f32.gmra.mxu0 %vm233_vm3, %v4155_v11  ;;  %v4159_v20 = vsel %vm1571_vm0, %v1568_v62, %v2991_v19 }
 0x9a3   :  { %v3494_v25 = vpop.eup %3493  ;;  %3328 = vmatmul.mubr.msk.f32.gmra.mxu1 %vm233_vm3, %v4159_v20  ;;  %3317 = vmatprep.mubr.msk.f32.mxu0 %vm3593_vm1, %v3592_v2  ;;  %v2961_v28 = vadd.f32 -1.0, %v3492_v31 }
 0x9a4   :  { %3330 = vmatprep.mubr.msk.f32.mxu1 %vm3593_vm1, %v3592_v2  ;;  %v2992_v55 = vadd.f32 -1.0, %v3494_v25  ;;  %3336 = vmatpush3.msra.mxu0 %v1849_v61 }
 0x9a5   :  { %v4167_v22 = vsel %vm898_vm2, %v895_v38, %v2961_v28 }
 0x9a6   :  { %3318 = vmatmul.mubr.msk.f32.gmra.mxu0 %vm233_vm3, %v4167_v22  ;;  %v4171_v45 = vsel %vm1572_vm5, %v1569_v7, %v2992_v55 }
 0x9a7   :  { %3331 = vmatmul.mubr.msk.f32.gmra.mxu1 %vm233_vm3, %v4171_v45  ;;  %3337 = vmatprep.mubr.msk.f32.mxu0 %vm3593_vm1, %v3592_v2 }
 0x9a8   :  { %3350 = vmatprep.mubr.msk.f32.mxu1 %vm3593_vm1, %v3592_v2 }
 0x9f9   :  { %v1700_v62 = vpop.xlane.xlu1 %1699 }
 0xa5e   :  { %v1792_v24 = vpop.f32.mrf.mxu1 }
 0xa5f   :  { %v1793_v32 = vadd.f32 %v4132_v44, %v1792_v24 }
 0xa60   :  { %v3326_v26 = vpop.f32.mrf.mxu1 }
 0xa62   :  { %v1677_v30 = vpop.f32.mrf.mxu0 }
 0xa63   :  { %v1678_v34 = vadd.f32 %v4132_v44, %v1677_v30  ;;  %v1797_v36 = vpop.f32.mrf.mxu1 }
 0xa64   :  { %v1798_v37 = vadd.f32 %v4132_v44, %v1797_v36  ;;  %v3316_v4 = vpop.f32.mrf.mxu0 }
 0xa65   :  { %3495 = vtanh.f32 %v1678_v34  ;;  %v3329_v43 = vpop.f32.mrf.mxu1 }
 0xa66   :  { %3497 = vtanh.f32 %v1798_v37  ;;  %v1682_v41 = vpop.f32.mrf.mxu0 }
 0xa67   :  { %3499 = vtanh.f32 %v1793_v32  ;;  %v1683_v33 = vadd.f32 %v4132_v44, %v1682_v41  ;;  %v1802_v47 = vpop.f32.mrf.mxu1 }
 0xa68   :  { %v1803_v13 = vadd.f32 %v4132_v44, %v1802_v47  ;;  %v3319_v42 = vpop.f32.mrf.mxu0 }
 0xa69   :  { %3501 = vtanh.f32 %v1683_v33  ;;  %v3332_v48 = vpop.f32.mrf.mxu1 }
 0xa6a   :  { %3503 = vtanh.f32 %v1803_v13 }
 0xa72   :  { %v3496_v14 = vpop.eup %3495 }
 0xa73   :  { %v3498_v50 = vpop.eup %3497  ;;  %v1697_v51 = vmul.f32 %v3496_v14, %v4136_v46 }
 0xa74   :  { %v3500_v60 = vpop.eup %3499  ;;  %v1810_v54 = vmul.f32 %v3498_v50, %v4136_v46 }
 0xa75   :  { %1701 = vadd.xlane.f32.xlu0 %v1697_v51  ;;  %v1809_v57 = vmul.f32 %v3500_v60, %v4136_v46 }
 0xa76   :  { %v3502_v56 = vpop.eup %3501  ;;  %1814 = vadd.xlane.f32.xlu1 %v1810_v54 }
 0xa77   :  { %v3504_v40 = vpop.eup %3503  ;;  %v1698_v29 = vmul.f32 %v3502_v56, %v4136_v46 }
 0xa78   :  { %v1811_v44 = vmul.f32 %v3504_v40, %v4136_v46 }
 0xa79   :  { %1812 = vadd.xlane.f32.xlu0 %v1809_v57  ;;  %v1703_v59 = vsel %vm618_vm4, %v1698_v29, 0.0 }
 0xa7a   :  { %v1816_v58 = vsel %vm618_vm4, %v1811_v44, 0.0 }
 0xa7b   :  { %1817 = vadd.xlane.f32.xlu1 %v1816_v58 }
 0xa7d   :  { %1704 = vadd.xlane.f32.xlu0 %v1703_v59 }
 0xafe   :  { %v1702_v53 = vpop.xlane.xlu0 %1701 }
 0xaff   :  { %v1815_v10 = vpop.xlane.xlu1 %1814  ;;  %v1706_v3 = vadd.f32 %v1702_v53, %v1700_v62 }
 0xb02   :  { %v1813_v63 = vpop.xlane.xlu0 %1812 }
 0xb03   :  { %v1819_v0 = vadd.f32 %v1815_v10, %v1813_v63 }
 0xb04   :  { %v1818_v1 = vpop.xlane.xlu1 %1817 }
 0xb05   :  { %v1820_v46 = vsel %vm618_vm4, %v1818_v1, 0.0 }
 0xb06   :  { %v1821_v5 = vadd.f32 %v1820_v46, %v1819_v0  ;;  %v1705_v6 = vpop.xlane.xlu0 %1704 }
 0xb07   :  { %v1707_v38 = vsel %vm618_vm4, %v1705_v6, 0.0 }
 0xb08   :  { %v1822_v7 = vrot.slane %v1821_v5, 4  ;;  %v1708_v8 = vadd.f32 %v1707_v38, %v1706_v3 }
 0xb0a   :  { %v1823_v9 = vadd.f32 %v1822_v7, %v1821_v5  ;;  %v1709_v12 = vrot.slane %v1708_v8, 4 }
 0xb0c   :  { %v1824_v15 = vrot.slane %v1823_v9, 2  ;;  %v1710_v16 = vadd.f32 %v1709_v12, %v1708_v8 }
 0xb0e   :  { %v1825_v17 = vadd.f32 %v1824_v15, %v1823_v9  ;;  %v1711_v39 = vrot.slane %v1710_v16, 2 }
 0xb10   :  { %v1826_v18 = vrot.slane %v1825_v17, 1  ;;  %v1712_v21 = vadd.f32 %v1711_v39, %v1710_v16 }
 0xb12   :  { %v1827_v19 = vadd.f32 %v1826_v18, %v1825_v17  ;;  %v1713_v31 = vrot.slane %v1712_v21, 1 }
 0xb14   :  { %v1714_v25 = vadd.f32 %v1713_v31, %v1712_v21  ;;  %v1828_v28 = vmul.f32 0.055555556, %v1827_v19 }
 0xb16   :  { %v1716_v55 = vmul.f32 0.055555556, %v1714_v25 }
 0xb18   :  { %v1829_v24 = vmax.f32 %v1716_v55, %v1828_v28 }
 0xb1a   :  { %v1830_v26 = vsub.f32 %v1716_v55, %v1829_v24  ;;  %v1833_v30 = vsub.f32 %v1828_v28, %v1829_v24  ;;  %v2109_v55 = vld [vmem:[%s4376_s9 + $0x8] sm:$0xff] }
 0xb1c   :  { %v1831_v32 = vmul.f32 1.442695, %v1830_v26  ;;  %v1834_v34 = vmul.f32 1.442695, %v1833_v30  ;;  %v2108_v26 = vld [vmem:[%s4376_s9] sm:$0xff] }
 0xb1e   :  { %3505 = vpow2.f32 %v1831_v32  ;;  %v1965_v32 = vld [vmem:[%s4377_s13] sm:$0x1] }
 0xb1f   :  { %3507 = vpow2.f32 %v1834_v34 }
 0xb2b   :  { %v3506_v36 = vpop.eup %3505 }
 0xb2c   :  { %v3508_v37 = vpop.eup %3507 }
 0xb2d   :  { %v1836_v4 = vadd.f32 %v3508_v37, %v3506_v36 }
 0xb2f   :  { %3509 = vrcp.f32 %v1836_v4  ;;  %v2110_v4 = vld [vmem:[%s4378_s17] sm:$0x1] }
 0xb3c   :  { %v3510_v43 = vpop.eup %3509 }
 0xb3d   :  { %v1838_v41 = vmul.f32 %v3510_v43, %v3506_v36  ;;  %v1842_v33 = vmul.f32 %v3510_v43, %v3508_v37 }
 0xb3f   :  { %v1839_v47 = vmul.f32 %v1838_v41, %v4118_v23  ;;  %v1843_v13 = vmul.f32 %v1842_v33, %v4149_v35  ;;  %v1840_v48 = vmul.f32 %v1838_v41, %v4155_v11  ;;  %v1844_v14 = vmul.f32 %v1842_v33, %v4159_v20  ;;  %v1964_v35 = vld [vmem:[%s3672_s6 + $0x8] sm:$0xff]  ;;  %v1963_v11 = vld [vmem:[%s3672_s6] sm:$0xff]  ;;  %s3598_s6 = smov [#allocation3]  }
 0xb40   :  { %v1841_v51 = vmul.f32 %v1838_v41, %v4167_v22  ;;  %v1845_v60 = vmul.f32 %v1842_v33, %v4171_v45  ;;  %3347 = vmatpush3.msra.mxu1 %v1964_v35  ;;  %v1949_v20 = vadd.s32 8, %v3860_v49  ;;  %v3001_v22 = vld [vmem:[%s3667_s30] ss:$0 sm:$0xff]  ;;  %s4387_s30 = sld [smem:[#allocation16_spill]]  ;;  %s2900_s27 = sshll.u32 %s3598_s6, 4  ;;  %s2901_s27 = int_to_ptr.vmem [resolvable:$true] %s2900_s27 }
 0xb41   :  { %v1846_v42 = vadd.f32 %v1843_v13, %v1839_v47  ;;  %v1847_v50 = vadd.f32 %v1844_v14, %v1840_v48  ;;  %3348 = vmatprep.subr.mxu1 %v3592_v2  ;;  %s3541_s7 = scalar_lea.vmem %s2901_s27, 16  ;;  %p3546_p1 = scmp.lt.s32.totalorder %s2901_s27, %s2901_s27 }
 0xb42   :  { %v1848_v23 = vadd.f32 %v1845_v60, %v1841_v51  ;;  %3349 = vmatpush3.msra.mxu1 %v1963_v11  ;;  %vm1952_vm4 = vcmp.lt.s32.totalorder %v1949_v20, 10  ;;  %p3542_p0 = scmp.ne.s32.totalorder %s2901_s27, %s3541_s7 }
 0xb43   :  { %3338 = vmatmul.mubr.msk.f32.vlgmr.msra.gmra.mxu0 %vm233_vm3, %v1846_v42  ;;  %3353 = vmatprep.subr.mxu1 %v3592_v2  ;;  %v4217_v45 = vsel %vm1952_vm4, 1.0, %v3592_v2 }
 0xb44   :  { %3340 = vmatprep.mubr.msk.f32.mxu0 %vm3593_vm1, %v3592_v2  ;;  %v1961_v57 = vsub.f32 1.0, %v4217_v45 }
 0xb47   :  { %3341 = vmatmul.mubr.msk.f32.gmra.mxu0 %vm233_vm3, %v1847_v50 }
 0xb48   :  { %3343 = vmatprep.mubr.msk.f32.mxu0 %vm3593_vm1, %v3592_v2 }
 0xb4b   :  { %3344 = vmatmul.mubr.msk.f32.gmra.mxu0 %vm233_vm3, %v1848_v23 }
 0xb4c   :  { %2323 = vmatprep.mubr.f32.mxu0 %v3592_v2 }
 0xc03   :  { %v1933_v54 = vpop.f32.mrf.mxu0 }
 0xc04   :  { %v4219_v56 = vadd.f32 %v3001_v22, %v1933_v54 }
 0xc05   :  { %v3339_v40 = vpop.f32.mrf.mxu0 }
 0xc06   :  { %v2111_v29 = vmul.f32 0.0, %v4219_v56  ;;  %v1969_v46 = vsel %vm233_vm3, %v4219_v56, 0.0 }
 0xc07   :  { %v1938_v44 = vpop.f32.mrf.mxu0 }
 0xc08   :  { %v4223_v58 = vadd.f32 %v3001_v22, %v1938_v44  ;;  %v2114_v62 = vsel %vm233_vm3, %v2111_v29, 0.0  ;;  %v2255_v44 = vld [vmem:[%s4379_s21 + $0x18] sm:$0xff]  ;;  %v2254_v29 = vld [vmem:[%s4379_s21 + $0x10] sm:$0xff] }
 0xc09   :  { %v3342_v59 = vpop.f32.mrf.mxu0  ;;  %2287 = vmatprep.subr.mxu0 %v2255_v44 }
 0xc0a   :  { %v1967_v49 = vmul.f32 %v4217_v45, %v4223_v58  ;;  %v2112_v27 = vmul.f32 %v1961_v57, %v4223_v58  ;;  %v2253_v59 = vld [vmem:[%s4379_s21 + $0x8] sm:$0xff]  ;;  %2288 = vmatpush1.msra.mxu0 %v2254_v29 }
 0xc0b   :  { %v1943_v61 = vpop.f32.mrf.mxu0  ;;  %2289 = vmatprep.subr.mxu0 %v2253_v59 }
 0xc0c   :  { %v1970_v53 = vsel %vm233_vm3, %v1967_v49, 0.0  ;;  %v2115_v10 = vsel %vm233_vm3, %v2112_v27, 0.0  ;;  %v4233_v63 = vadd.f32 %v3001_v22, %v1943_v61  ;;  %v2252_v49 = vld [vmem:[%s4379_s21] sm:$0xff]  ;;  %v2333_v27 = vld [vmem:[%s4380_s25 + $0x18] sm:$0xff]  ;;  %v2332_v61 = vld [vmem:[%s4380_s25 + $0x10] sm:$0xff] }
 0xc0d   :  { %v3345_v0 = vpop.f32.mrf.mxu0  ;;  %v2116_v1 = vadd.f32 %v2115_v10, %v2114_v62  ;;  %v1971_v6 = vadd.f32 %v1970_v53, %v1969_v46  ;;  %2290 = vmatpush1.msra.mxu0 %v2252_v49  ;;  %v2331_v62 = vld [vmem:[%s4380_s25 + $0x8] sm:$0xff]  ;;  %v2330_v53 = vld [vmem:[%s4380_s25] sm:$0xff] }
 0xc0e   :  { %v1968_v3 = vmul.f32 0.0, %v4233_v63  ;;  %v2117_v5 = vsel %vm1972_vm6, %v4233_v63, 0.0  ;;  %3360 = vmatprep.subr.mxu0 %v3592_v2 }
 0xc0f   :  { %v2118_v38 = vadd.f32 %v2117_v5, %v2116_v1 }
 0xc10   :  { %v1973_v7 = vsel %vm1972_vm6, %v1968_v3, 0.0 }
 0xc11   :  { %v1974_v8 = vadd.f32 %v1973_v7, %v1971_v6  ;;  %v2119_v9 = vrot.slane %v2118_v38, 4 }
 0xc13   :  { %v1975_v12 = vrot.slane %v1974_v8, 4  ;;  %v2120_v15 = vadd.f32 %v2119_v9, %v2118_v38 }
 0xc15   :  { %v1976_v16 = vadd.f32 %v1975_v12, %v1974_v8  ;;  %v2121_v17 = vrot.slane %v2120_v15, 2 }
 0xc17   :  { %v1977_v39 = vrot.slane %v1976_v16, 2  ;;  %v2122_v18 = vadd.f32 %v2121_v17, %v2120_v15 }
 0xc19   :  { %v1978_v21 = vadd.f32 %v1977_v39, %v1976_v16  ;;  %v2123_v31 = vrot.slane %v2122_v18, 1 }
 0xc1b   :  { %v1979_v19 = vrot.slane %v1978_v21, 1  ;;  %v2124_v24 = vadd.f32 %v2123_v31, %v2122_v18 }
 0xc1d   :  { %v1980_v25 = vadd.f32 %v1979_v19, %v1978_v21  ;;  %v2126_v30 = vmul.f32 0.125, %v2124_v24 }
 0xc1f   :  { %v1982_v28 = vmul.f32 0.1, %v1980_v25 }
 0xc21   :  { %3351 = vmatmul.mubr.msk.f32.vlgmr.msra.gmra.mxu1 %vm233_vm3, %v1982_v28 }
 0xc22   :  { %3354 = vmatpush3.msra.mxu1 %v2109_v55  ;;  %3357 = vmatprep.mubr.msk.f32.mxu1 %vm3593_vm1, %v3592_v2 }
 0xc23   :  { %3355 = vmatprep.subr.mxu1 %v3592_v2 }
 0xc24   :  { %3356 = vmatpush3.msra.mxu1 %v2108_v26 }
 0xc25   :  { %3358 = vmatmul.mubr.msk.f32.vlgmr.msra.gmra.mxu1 %vm233_vm3, %v2126_v30  ;;  %2365 = vmatprep.subr.mxu1 %v2333_v27 }
 0xc26   :  { %2401 = vmatprep.mubr.f32.mxu1 %v3592_v2  ;;  %2366 = vmatpush1.msra.mxu1 %v2332_v61 }
 0xc27   :  { %2367 = vmatprep.subr.mxu1 %v2331_v62 }
 0xc28   :  { %2368 = vmatpush1.msra.mxu1 %v2330_v53 }
 0xc29   :  { %3367 = vmatprep.subr.mxu1 %v3592_v2 }
 0xce1   :  { %v2052_v34 = vpop.f32.mrf.mxu1 }
 0xce2   :  { %v2053_v36 = vadd.f32 %v2052_v34, %v1965_v32 }
 0xce3   :  { %v3352_v37 = vpop.f32.mrf.mxu1 }
 0xce4   :  { %3511 = vtanh.f32 %v2053_v36 }
 0xce5   :  { %v2196_v43 = vpop.f32.mrf.mxu1 }
 0xce6   :  { %v2197_v41 = vadd.f32 %v2196_v43, %v2110_v4 }
 0xce7   :  { %v3359_v33 = vpop.f32.mrf.mxu1 }
 0xce8   :  { %3513 = vtanh.f32 %v2197_v41 }
 0xcf1   :  { %v3512_v47 = vpop.eup %3511 }
 0xcf2   :  { %v2060_v13 = vrot.slane %v3512_v47, %v3863_v52 }
 0xcf4   :  { %v2062_v42 = vmul.f32 %v2060_v13, %v4223_v58  ;;  %v2061_v48 = vmul.f32 %v2060_v13, %v4219_v56  ;;  %v2063_v22 = vmul.f32 %v2060_v13, %v4233_v63 }
 0xcf5   :  { %v3514_v14 = vpop.eup %3513 }
 0xcf6   :  { %v2067_v50 = vsel %vm233_vm3, %v2062_v42, 0.0  ;;  %v2064_v51 = vsel %vm233_vm3, %v2061_v48, 0.0  ;;  %v2204_v60 = vrot.slane %v3514_v14, %v3863_v52  ;;  %v2070_v52 = vsel %vm1972_vm6, %v2063_v22, 0.0 }
 0xcf7   :  { %2068 = vadd.xlane.f32.xlu0 %v2067_v50  ;;  %2065 = vadd.xlane.f32.xlu1 %v2064_v51 }
 0xcf8   :  { %v2206_v23 = vmul.f32 %v2204_v60, %v4223_v58  ;;  %v2205_v35 = vmul.f32 %v2204_v60, %v4219_v56  ;;  %v2207_v54 = vmul.f32 %v2204_v60, %v4233_v63 }
 0xcfa   :  { %v2211_v11 = vsel %vm233_vm3, %v2206_v23, 0.0  ;;  %v2208_v20 = vsel %vm233_vm3, %v2205_v35, 0.0  ;;  %v2214_v40 = vsel %vm1972_vm6, %v2207_v54, 0.0 }
 0xcfb   :  { %2212 = vadd.xlane.f32.xlu0 %v2211_v11  ;;  %2209 = vadd.xlane.f32.xlu1 %v2208_v20 }
 0xcff   :  { %2071 = vadd.xlane.f32.xlu0 %v2070_v52  ;;  %2215 = vadd.xlane.f32.xlu1 %v2214_v40 }
 0xd80   :  { %v2069_v10 = vpop.xlane.xlu0 %2068  ;;  %v2066_v0 = vpop.xlane.xlu1 %2065 }
 0xd81   :  { %v2074_v1 = vsub.f32 0.0, %v2069_v10  ;;  %v2073_v46 = vsub.f32 0.0, %v2066_v0 }
 0xd83   :  { %v2078_v3 = vmul.f32 1.442695, %v2074_v1  ;;  %v2076_v5 = vmul.f32 1.442695, %v2073_v46 }
 0xd84   :  { %v2213_v6 = vpop.xlane.xlu0 %2212  ;;  %v2210_v38 = vpop.xlane.xlu1 %2209 }
 0xd85   :  { %3515 = vpow2.f32 %v2078_v3  ;;  %v2218_v7 = vsub.f32 0.0, %v2213_v6  ;;  %v2217_v8 = vsub.f32 0.0, %v2210_v38  ;;  %v2445_v3 = vld [vmem:[%s4381_s29 + $0x8] sm:$0xff]  ;;  %v2444_v6 = vld [vmem:[%s4381_s29] sm:$0xff] }
 0xd86   :  { %3517 = vpow2.f32 %v2076_v5  ;;  %v2443_v38 = vld [vmem:[%s4382_s3 + $0x8] sm:$0xff] }
 0xd87   :  { %v2222_v9 = vmul.f32 1.442695, %v2218_v7  ;;  %v2220_v12 = vmul.f32 1.442695, %v2217_v8  ;;  %v2442_v7 = vld [vmem:[%s4382_s3] sm:$0xff]  ;;  %v2441_v8 = vld [vmem:[%s4383_s8 + $0xf8] sm:$0xff] }
 0xd88   :  { %v2072_v15 = vpop.xlane.xlu0 %2071  ;;  %v2216_v16 = vpop.xlane.xlu1 %2215 }
 0xd89   :  { %3519 = vpow2.f32 %v2222_v9  ;;  %v2075_v17 = vsub.f32 0.0, %v2072_v15  ;;  %v2219_v39 = vsub.f32 0.0, %v2216_v16  ;;  %v2425_v9 = vld [vmem:[%s4383_s8 + $0x78] sm:$0xff]  ;;  %v2424_v15 = vld [vmem:[%s4383_s8 + $0x70] sm:$0xff]  ;;  %v2439_v16 = vld [vmem:[%s4383_s8 + $0xe8] sm:$0xff] }
 0xd8a   :  { %3521 = vpow2.f32 %v2220_v12  ;;  %v2440_v12 = vld [vmem:[%s4383_s8 + $0xf0] sm:$0xff] }
 0xd8b   :  { %v2080_v18 = vmul.f32 1.442695, %v2075_v17  ;;  %v2224_v21 = vmul.f32 1.442695, %v2219_v39  ;;  %v2423_v17 = vld [vmem:[%s4383_s8 + $0x68] sm:$0xff]  ;;  %v2438_v39 = vld [vmem:[%s4383_s8 + $0xe0] sm:$0xff] }
 0xd8d   :  { %3523 = vpow2.f32 %v2080_v18  ;;  %v2422_v18 = vld [vmem:[%s4383_s8 + $0x60] sm:$0xff] }
 0xd8e   :  { %3525 = vpow2.f32 %v2224_v21  ;;  %v2437_v21 = vld [vmem:[%s4383_s8 + $0xd8] sm:$0xff] }
 0xd92   :  { %v3516_v19 = vpop.eup %3515 }
 0xd93   :  { %v3518_v31 = vpop.eup %3517  ;;  %v2083_v25 = vadd.f32 1.0, %v3516_v19  ;;  %v2421_v19 = vld [vmem:[%s4383_s8 + $0x58] sm:$0xff] }
 0xd94   :  { %v2082_v28 = vadd.f32 1.0, %v3518_v31  ;;  %v2436_v31 = vld [vmem:[%s4383_s8 + $0xd0] sm:$0xff] }
 0xd95   :  { %3527 = vrcp.f32 %v2083_v25  ;;  %v2420_v25 = vld [vmem:[%s4383_s8 + $0x50] sm:$0xff] }
 0xd96   :  { %v3520_v55 = vpop.eup %3519  ;;  %3529 = vrcp.f32 %v2082_v28  ;;  %v2435_v28 = vld [vmem:[%s4383_s8 + $0xc8] sm:$0xff] }
 0xd97   :  { %v3522_v24 = vpop.eup %3521  ;;  %v2227_v26 = vadd.f32 1.0, %v3520_v55  ;;  %v2419_v55 = vld [vmem:[%s4383_s8 + $0x48] sm:$0xff] }
 0xd98   :  { %v2226_v30 = vadd.f32 1.0, %v3522_v24  ;;  %v2434_v24 = vld [vmem:[%s4383_s8 + $0xc0] sm:$0xff] }
 0xd99   :  { %3531 = vrcp.f32 %v2227_v26  ;;  %v2418_v26 = vld [vmem:[%s4383_s8 + $0x40] sm:$0xff] }
 0xd9a   :  { %v3524_v32 = vpop.eup %3523  ;;  %3533 = vrcp.f32 %v2226_v30  ;;  %v2433_v30 = vld [vmem:[%s4383_s8 + $0xb8] sm:$0xff] }
 0xd9b   :  { %v3526_v34 = vpop.eup %3525  ;;  %v2084_v36 = vadd.f32 1.0, %v3524_v32  ;;  %v2417_v32 = vld [vmem:[%s4383_s8 + $0x38] sm:$0xff] }
 0xd9c   :  { %v2228_v37 = vadd.f32 1.0, %v3526_v34  ;;  %v2432_v34 = vld [vmem:[%s4383_s8 + $0xb0] sm:$0xff] }
 0xd9d   :  { %3535 = vrcp.f32 %v2084_v36  ;;  %v2416_v36 = vld [vmem:[%s4383_s8 + $0x30] sm:$0xff] }
 0xd9e   :  { %3537 = vrcp.f32 %v2228_v37  ;;  %v2431_v37 = vld [vmem:[%s4383_s8 + $0xa8] sm:$0xff] }
 0xda2   :  { %v3528_v4 = vpop.eup %3527 }
 0xda3   :  { %v2092_v43 = vmul.f32 %v3528_v4, %v4217_v45  ;;  %v3530_v41 = vpop.eup %3529  ;;  %v2415_v4 = vld [vmem:[%s4383_s8 + $0x28] sm:$0xff] }
 0xda4   :  { %v2094_v50 = vmul.f32 %v3530_v41, %v4219_v56  ;;  %v2414_v41 = vld [vmem:[%s4383_s8 + $0x20] sm:$0xff] }
 0xda5   :  { %v2095_v42 = vmul.f32 %v2092_v43, %v4223_v58  ;;  %v2430_v43 = vld [vmem:[%s4383_s8 + $0xa0] sm:$0xff] }
 0xda6   :  { %v3532_v33 = vpop.eup %3531  ;;  %v2097_v54 = vsel %vm233_vm3, %v2094_v50, 0.0  ;;  %v2426_v50 = vld [vmem:[%s4383_s8 + $0x80] sm:$0xff] }
 0xda7   :  { %v3534_v47 = vpop.eup %3533  ;;  %v2236_v13 = vmul.f32 %v3532_v33, %v1961_v57  ;;  %v2098_v11 = vsel %vm233_vm3, %v2095_v42, 0.0  ;;  %v2429_v33 = vld [vmem:[%s4383_s8 + $0x98] sm:$0xff]  ;;  %v2412_v42 = vld [vmem:[%s4383_s8 + $0x10] sm:$0xff] }
 0xda8   :  { %v2235_v48 = vmul.f32 0.0, %v3534_v47  ;;  %v2099_v52 = vadd.f32 %v2098_v11, %v2097_v54  ;;  %v2413_v47 = vld [vmem:[%s4383_s8 + $0x18] sm:$0xff] }
 0xda9   :  { %v2239_v14 = vmul.f32 %v2236_v13, %v4223_v58  ;;  %v2428_v13 = vld [vmem:[%s4383_s8 + $0x90] sm:$0xff] }
 0xdaa   :  { %v3536_v51 = vpop.eup %3535  ;;  %v2238_v60 = vmul.f32 %v2235_v48, %v4219_v56  ;;  %v2427_v48 = vld [vmem:[%s4383_s8 + $0x88] sm:$0xff] }
 0xdab   :  { %v3538_v23 = vpop.eup %3537  ;;  %v2242_v35 = vsel %vm233_vm3, %v2239_v14, 0.0  ;;  %v2093_v20 = vmul.f32 0.0, %v3536_v51  ;;  %v2411_v14 = vld [vmem:[%s4383_s8 + $0x8] sm:$0xff]  ;;  %v2410_v51 = vld [vmem:[%s4383_s8] sm:$0xff] }
 0xdac   :  { %v2241_v22 = vsel %vm233_vm3, %v2238_v60, 0.0  ;;  %v2240_v45 = vmul.f32 %v3538_v23, %v4233_v63 }
 0xdad   :  { %v2243_v57 = vadd.f32 %v2242_v35, %v2241_v22  ;;  %v2096_v58 = vmul.f32 %v2093_v20, %v4233_v63 }
 0xdae   :  { %v2244_v40 = vsel %vm1972_vm6, %v2240_v45, 0.0 }
 0xdaf   :  { %v2100_v56 = vsel %vm1972_vm6, %v2096_v58, 0.0  ;;  %v2245_v44 = vadd.f32 %v2244_v40, %v2243_v57  ;;  %v2660_v40 = vld [vmem:[%s4384_s14 + $0x8] sm:$0xff] }
 0xdb0   :  { %v2101_v29 = vadd.f32 %v2100_v56, %v2099_v52  ;;  %v2659_v56 = vld [vmem:[%s4384_s14] sm:$0xff] }
 0xdb1   :  { %v2246_v59 = vrot.slane %v2245_v44, 4 }
 0xdb2   :  { %v2102_v49 = vrot.slane %v2101_v29, 4 }
 0xdb3   :  { %v2247_v27 = vadd.f32 %v2246_v59, %v2245_v44  ;;  %v2586_v44 = vld [vmem:[%s4385_s19] sm:$0x1] }
 0xdb4   :  { %v2103_v61 = vadd.f32 %v2102_v49, %v2101_v29 }
 0xdb5   :  { %v2248_v62 = vrot.slane %v2247_v27, 2 }
 0xdb6   :  { %v2104_v53 = vrot.slane %v2103_v61, 2 }
 0xdb7   :  { %v2249_v10 = vadd.f32 %v2248_v62, %v2247_v27 }
 0xdb8   :  { %v2105_v0 = vadd.f32 %v2104_v53, %v2103_v61  ;;  %v2736_v53 = vld [vmem:[%s4386_s24] sm:$0xff] }
 0xdb9   :  { %v2250_v63 = vrot.slane %v2249_v10, 1 }
 0xdba   :  { %v2106_v1 = vrot.slane %v2105_v0, 1 }
 0xdbb   :  { %v2251_v46 = vadd.f32 %v2250_v63, %v2249_v10  ;;  %v2661_v10 = vld [vmem:[%s4387_s30] sm:$0x1] }
 0xdbc   :  { %v2107_v5 = vadd.f32 %v2106_v1, %v2105_v0 }
 0xdbd   :  { %3008 = vmatmul.mubr.msk.f32.vlgmr.msra.gmra.mxu0 %vm233_vm3, %v2251_v46 }
 0xdbe   :  { %3361 = vmatpush3.msra.mxu0 %v2445_v3  ;;  %3009 = vmatmul.mubr.msk.f32.vlgmr.msra.gmra.mxu1 %vm233_vm3, %v2107_v5  ;;  %v2812_v3 = vld [vmem:[%s3742_s20] sm:$0xf]  ;;  %s3545_s20 = scalar_lea.vmem %s2901_s27, 32 }
 0xdbf   :  { %3362 = vmatprep.subr.mxu0 %v3592_v2  ;;  %3364 = vmatprep.mubr.msk.f32.mxu0 %vm3593_vm1, %v3592_v2  ;;  %p3547_p2 = scmp.lt.s32.totalorder %s3545_s20, %s3541_s7 }
 0xdc0   :  { %3363 = vmatpush3.msra.mxu0 %v2444_v6  ;;  %3368 = vmatpush3.msra.mxu1 %v2443_v38 }
 0xdc1   :  { %3365 = vmatmul.mubr.msk.f32.vlgmr.msra.gmra.mxu0 %vm233_vm3, %v2251_v46  ;;  %3369 = vmatprep.subr.mxu1 %v3592_v2  ;;  %p3548_p3 = por %p3547_p2, %p3546_p1 }
 0xdc2   :  { %3370 = vmatpush3.msra.mxu1 %v2442_v7  ;;  %3371 = vmatprep.mubr.msk.f32.mxu1 %vm3593_vm1, %v3592_v2 }
 0xdc3   :  { %3372 = vmatmul.mubr.msk.f32.vlgmr.msra.gmra.mxu1 %vm233_vm3, %v2107_v5  ;;  %3106 = vmatprep.subr.mxu0 %v2441_v8  ;;  %v2737_v5 = vld [vmem:[%s3737_s12] sm:$0x1]  ;;  %p3549_p4 = pnand %p3548_p3, %p3542_p0 }
 0xdc4   :  { %3107 = vmatpush3.msra.mxu0 %v2425_v9  ;;  %3374 = vmatprep.subr.mxu1 %v3592_v2  ;;  %v2813_v9 = vld [vmem:[#allocation2] sm:$0x1] }
 0xdc5   :  { %3108 = vmatprep.subr.mxu0 %v2440_v12  ;;  %3378 = vmatprep.mubr.msk.f32.mxu1 %vm3593_vm1, %v3592_v2 }
 0xdc6   :  { %3109 = vmatpush3.msra.mxu0 %v2424_v15  ;;  %3375 = vmatpush3.msra.mxu1 %v2660_v40 }
 0xdc7   :  { %3110 = vmatprep.subr.mxu0 %v2439_v16  ;;  %3376 = vmatprep.subr.mxu1 %v3592_v2 }
 0xdc8   :  { %3111 = vmatpush3.msra.mxu0 %v2423_v17  ;;  %3377 = vmatpush3.msra.mxu1 %v2659_v56 }
 0xdc9   :  { %3112 = vmatprep.subr.mxu0 %v2438_v39  ;;  %3381 = vmatprep.subr.mxu1 %v3592_v2 }
 0xdca   :  { %3113 = vmatpush3.msra.mxu0 %v2422_v18 }
 0xdcb   :  { %3114 = vmatprep.subr.mxu0 %v2437_v21 }
 0xdcc   :  { %3115 = vmatpush3.msra.mxu0 %v2421_v19 }
 0xdcd   :  { %3116 = vmatprep.subr.mxu0 %v2436_v31 }
 0xdce   :  { %3117 = vmatpush3.msra.mxu0 %v2420_v25 }
 0xdcf   :  { %3118 = vmatprep.subr.mxu0 %v2435_v28 }
 0xdd0   :  { %3119 = vmatpush3.msra.mxu0 %v2419_v55 }
 0xdd1   :  { %3120 = vmatprep.subr.mxu0 %v2434_v24 }
 0xdd2   :  { %3121 = vmatpush3.msra.mxu0 %v2418_v26 }
 0xdd3   :  { %3122 = vmatprep.subr.mxu0 %v2433_v30 }
 0xdd4   :  { %3123 = vmatpush3.msra.mxu0 %v2417_v32 }
 0xdd5   :  { %3124 = vmatprep.subr.mxu0 %v2432_v34 }
 0xdd6   :  { %3125 = vmatpush3.msra.mxu0 %v2416_v36 }
 0xdd7   :  { %3126 = vmatprep.subr.mxu0 %v2431_v37 }
 0xdd8   :  { %3127 = vmatpush3.msra.mxu0 %v2415_v4 }
 0xdd9   :  { %3128 = vmatprep.subr.mxu0 %v2430_v43 }
 0xdda   :  { %3129 = vmatpush3.msra.mxu0 %v2414_v41 }
 0xddb   :  { %3130 = vmatprep.subr.mxu0 %v2429_v33 }
 0xddc   :  { %3131 = vmatpush3.msra.mxu0 %v2413_v47 }
 0xddd   :  { %3132 = vmatprep.subr.mxu0 %v2428_v13 }
 0xdde   :  { %3133 = vmatpush3.msra.mxu0 %v2412_v42 }
 0xddf   :  { %3134 = vmatprep.subr.mxu0 %v2427_v48 }
 0xde0   :  { %3135 = vmatpush3.msra.mxu0 %v2411_v14 }
 0xde1   :  { %3136 = vmatprep.subr.mxu0 %v2426_v50 }
 0xde2   :  { %3137 = vmatpush3.msra.mxu0 %v2410_v51 }
 0xe7d   :  { %v2325_v60 = vpop.f32.mrf.mxu0 }
 0xe7e   :  { %v2403_v23 = vpop.f32.mrf.mxu1 }
 0xe7f   :  { %v2327_v35 = vpop.f32.mrf.mxu0  ;;  %v2408_v45 = vmul.f32 %v2403_v23, %v2325_v60 }
 0xe80   :  { %v2405_v11 = vpop.f32.mrf.mxu1 }
 0xe81   :  { %v2409_v20 = vmul.f32 %v2405_v11, %v2327_v35  ;;  %v2512_v22 = vpop.f32.mrf.mxu0 }
 0xe83   :  { %v3366_v57 = vpop.f32.mrf.mxu0  ;;  %v2582_v54 = vpop.f32.mrf.mxu1  ;;  %2652 = vmatprep.mubr.f32.mxu0 %v2409_v20 }
 0xe84   :  { %v2583_v58 = vadd.f32 %v2582_v54, %v2512_v22  ;;  %2653 = vmatmul.mubr.f32.vlgmr.msra.gmra.mxu0 %v2408_v45 }
 0xe85   :  { %v3373_v52 = vpop.f32.mrf.mxu1 }
 0xe86   :  { %v2587_v49 = vadd.f32 %v2586_v44, %v2583_v58 }
 0xf44   :  { %v3138_v29 = vpop.f32.mrf.mxu0 }
 0xf46   :  { %v3139_v59 = vpop.f32.mrf.mxu0 }
 0xf47   :  { %v3140_v27 = vadd.f32 %v3139_v59, %v3138_v29 }
 0xf49   :  { %v2655_v61 = vadd.f32 %v3140_v27, %v2587_v49 }
 0xf4b   :  { %3539 = vtanh.f32 %v2655_v61 }
 0xf58   :  { %v3540_v62 = vpop.eup %3539 }
 0xf59   :  { %3379 = vmatmul.mubr.msk.f32.vlgmr.msra.gmra.mxu1 %vm233_vm3, %v3540_v62  ;;  %vm2814_vm3 = vcmask 31744  }
 0xf5a   :  { %3383 = vmatprep.mubr.msk.f32.mxu1 %vm3593_vm1, %v3592_v2  ;;  %3382 = vmatpush3.msra.mxu1 %v2736_v53 }
 0xf5b   :  { %3386 = vmatprep.subr.mxu1 %v3592_v2 }
0x1019   :  { %v2731_v0 = vpop.f32.mrf.mxu1 }
0x101a   :  { %v2732_v63 = vadd.f32 %v2731_v0, %v2661_v10 }
0x101b   :  { %v3380_v1 = vpop.f32.mrf.mxu1 }
0x101c   :  { %v2735_v46 = vmax.f32 %v2732_v63, 0.0 }
0x101e   :  { %3384 = vmatmul.mubr.msk.f32.vlgmr.msra.gmra.mxu1 %vm882_vm12, %v2735_v46 }
0x101f   :  { %3388 = vmatprep.mubr.msk.f32.mxu1 %vm3593_vm1, %v3592_v2  ;;  %3387 = vmatpush3.msk.msra.mxu1 %vm2818_vm7, %v2812_v3 }
0x10de   :  { %v2807_v6 = vpop.f32.mrf.mxu1 }
0x10df   :  { %v2808_v38 = vadd.f32 %v2807_v6, %v2737_v5 }
0x10e0   :  { %v3385_v7 = vpop.f32.mrf.mxu1 }
0x10e1   :  { %v2811_v8 = vmax.f32 %v2808_v38, 0.0 }
0x10e3   :  { %3389 = vmatmul.mubr.msk.f32.vlgmr.msra.gmra.mxu1 %vm2814_vm3, %v2811_v8 }
0x11a3   :  { %v2888_v12 = vpop.f32.mrf.mxu1 }
0x11a4   :  { %v2889_v15 = vadd.f32 %v2888_v12, %v2813_v9 }
0x11a5   :  { %v3390_v16 = vpop.f32.mrf.mxu1 }
0x11a6   :  { %2893 = vst.msk [vmem:[#allocation3] sm:$0x1] %vm2892_vm9, %v2889_v15 }
0x11a7   :  { %3552 = shalt.err (!%p3549_p4)
}
0x11a8   :  { %2903 = dma.vmem_to_hbm [thread:$0]  %s2901_s27, 16, %s3750_s4, [#allocation4]  }
0x11a9   :  { %3561 = dma.done.wait [#allocation4], 16  }
0x11aa   :  { %3562 = vsyncadd [#allocation4], 4294967280 }
0x11ab   :  { %2907 = vsyncpa [#allocation4], 1 }

</bundles_post_ra>
